<compile_context>
chip_gen: v5e
topology: v5e:2x2
jax: 0.10.0
libtpu: 0.0.40
codegen_flags: <defaults>
</compile_context>

<pallas_src>
import functools

import jax
import jax.numpy as jnp
from jax.experimental import pallas as pl
from jax.experimental.pallas import tpu as pltpu


def _round_up(x, m):
    return ((x + m - 1) // m) * m


def _lane_shift(x, shift, size):
    """y[:, i] = x[:, (i + shift) % size]  (static lane rotation via 2 slices)."""
    t = shift % size
    if t == 0:
        return x
    return jnp.concatenate([x[:, t:], x[:, :t]], axis=1)


# ----------------------------------------------------------------------------
# Fused kernel: the whole [Conv2d + PReLU] * L stack on one image's canvas.
# ----------------------------------------------------------------------------
def _logit_block_kernel(cfg, x_ref, masks_ref, alphas_ref, *rest):
    # cfg        : (k_sizes, dilations, paddings, Wc, Lc)  -- static python
    # x_ref      : (Cin0, Lc) f32   zero-padded image canvas, pixels on lanes
    # masks_ref  : (L, Lc)    f32   per-layer valid-output masks
    # alphas_ref : (L,)       f32   PReLU slopes, in SMEM
    # rest       : w_0, b_0, ..., w_{L-1}, b_{L-1}, out_ref
    #              w_l : (k*k, Cout_l, Cin_l) f32 ; b_l : (Cout_l, 1) f32
    # out_ref    : (Cout_last, Lc)
    k_sizes, dilations, paddings, Wc, Lc = cfg
    out_ref = rest[-1]
    w_refs = rest[0:-1:2]
    b_refs = rest[1:-1:2]

    xc = x_ref[...]                          # (Cin, Lc) f32, resident in vregs
    masks = masks_ref[...]                   # (L, Lc) f32

    for l, (k, d, p) in enumerate(zip(k_sizes, dilations, paddings)):
        cout = b_refs[l].shape[0]
        xb = xc.astype(jnp.bfloat16)         # bf16 MXU operand (cast once/layer)
        acc = jnp.zeros((cout, Lc), jnp.float32)
        for kh in range(k):
            for kw in range(k):
                # Flat lane offset of this tap inside the padded canvas.
                s = (kh * d - p) * Wc + (kw * d - p)
                xs = _lane_shift(xb, s, Lc)                      # (Cin, Lc)
                wt = w_refs[l][kh * k + kw].astype(jnp.bfloat16)  # (Cout, Cin)
                acc = acc + jnp.dot(wt, xs,
                                    preferred_element_type=jnp.float32)
        acc = acc + b_refs[l][...]                       # bias (f32)
        a = alphas_ref[l]                                # PReLU slope from SMEM
        acc = jnp.where(acc >= 0, acc, a * acc)          # PReLU in f32
        xc = acc * masks[l:l + 1, :]                     # re-zero halo + tail
    out_ref[...] = xc.astype(out_ref.dtype)


# ----------------------------------------------------------------------------
# Wrapper
# ----------------------------------------------------------------------------
class LogitBlockPallas:
    """JAX/Pallas port of LogitBlock: Sequential([Conv2d + PReLU] * L)."""

    def __init__(self, channels, k_sizes, dilation, padding, key):
        self.channels = list(channels)
        self.k_sizes = list(k_sizes)
        self.dilation = list(dilation)
        self.padding = list(padding)
        self.params = []
        for i in range(len(channels) - 1):
            cin, cout, k = channels[i], channels[i + 1], k_sizes[i]
            key, wk, bk = jax.random.split(key, 3)
            fan_in = cin * k * k
            bound = 1.0 / float(fan_in) ** 0.5
            w = jax.random.uniform(wk, (cout, cin, k, k), jnp.float32, -bound, bound)
            b = jax.random.uniform(bk, (cout,), jnp.float32, -bound, bound)
            alpha = jnp.float32(0.25)   # nn.PReLU() default: one shared param
            self.params.append((w, b, alpha))

    def __call__(self, x_nchw):
        N, C, H, W = x_nchw.shape
        assert C == self.channels[0]
        L = len(self.params)

        # Per-layer spatial sizes: Hout = H + 2p - d*(k-1).
        hs, ws = [H], [W]
        for i in range(L):
            eff = self.dilation[i] * (self.k_sizes[i] - 1)
            hs.append(hs[-1] + 2 * self.padding[i] - eff)
            ws.append(ws[-1] + 2 * self.padding[i] - eff)
        assert min(hs) > 0 and min(ws) > 0
        P = max(self.padding)
        Hc = max(hs) + 2 * P
        Wc = max(ws) + 2 * P
        Lc = _round_up(Hc * Wc, 128)          # lane-dense flat canvas length

        # ---- host-side layout prep (cheap, O(activation size), done once) ----
        # Zero-padded canvas, channels-major, pixels flattened on lanes.
        x = x_nchw.astype(jnp.float32)
        canvas = jnp.zeros((N, C, Hc, Wc), jnp.float32)
        canvas = canvas.at[:, :, P:P + H, P:P + W].set(x)
        canvas = canvas.reshape(N, C, Hc * Wc)
        canvas = jnp.pad(canvas, ((0, 0), (0, 0), (0, Lc - Hc * Wc)))
        canvas = jnp.transpose(canvas, (1, 0, 2)).reshape(C, N * Lc)

        # Per-layer masks of the valid output region (halo + tail -> 0).
        masks = []
        for i in range(L):
            m = jnp.zeros((Hc, Wc), jnp.float32)
            m = m.at[P:P + hs[i + 1], P:P + ws[i + 1]].set(1.0)
            masks.append(jnp.pad(m.reshape(Hc * Wc), (0, Lc - Hc * Wc)))
        masks = jnp.stack(masks)                                   # (L, Lc)

        alphas = jnp.stack([a for (_, _, a) in self.params])       # (L,) -> SMEM

        # Per-layer weights as (k*k, Cout, Cin) (tap-major), biases as (Cout, 1).
        wb_inputs, wb_specs = [], []
        for i, (w, b, _) in enumerate(self.params):
            k = self.k_sizes[i]
            cout, cin = w.shape[0], w.shape[1]
            w_t = jnp.transpose(w, (2, 3, 0, 1)).reshape(k * k, cout, cin)
            wb_inputs += [w_t, b.reshape(cout, 1)]
            wb_specs += [
                pl.BlockSpec((k * k, cout, cin), lambda n: (0, 0, 0)),
                pl.BlockSpec((cout, 1), lambda n: (0, 0)),
            ]

        cout_last = self.channels[-1]
        cfg = (tuple(self.k_sizes), tuple(self.dilation), tuple(self.padding),
               Wc, Lc)

        out_flat = pl.pallas_call(
            functools.partial(_logit_block_kernel, cfg),
            out_shape=jax.ShapeDtypeStruct((cout_last, N * Lc), jnp.float32),
            grid_spec=pltpu.PrefetchScalarGridSpec(
                num_scalar_prefetch=0,
                grid=(N,),                       # one image / step, "parallel"
                in_specs=[
                    pl.BlockSpec((C, Lc), lambda n: (0, n)),        # canvas
                    pl.BlockSpec((L, Lc), lambda n: (0, 0)),        # masks
                    pl.BlockSpec(memory_space=pltpu.MemorySpace.SMEM),  # alphas
                ] + wb_specs,
                out_specs=pl.BlockSpec((cout_last, Lc), lambda n: (0, n)),
            ),
            compiler_params=pltpu.CompilerParams(
                dimension_semantics=("parallel",)),
        )(canvas, masks, alphas, *wb_inputs)

        # Extract the final valid window and return NCHW.
        out = out_flat.reshape(cout_last, N, Lc)[:, :, :Hc * Wc]
        out = out.reshape(cout_last, N, Hc, Wc)[:, :, P:P + hs[-1], P:P + ws[-1]]
        return jnp.transpose(out, (1, 0, 2, 3))


# ----------------------------------------------------------------------------
# Pure-JAX reference (numerical sanity check, f32 throughout)
# ----------------------------------------------------------------------------
def _reference_forward(x_nchw, block):
    x = x_nchw.astype(jnp.float32)
    for i, (w, b, a) in enumerate(block.params):
        d, p = block.dilation[i], block.padding[i]
        x = jax.lax.conv_general_dilated(
            x, w, window_strides=(1, 1), padding=((p, p), (p, p)),
            rhs_dilation=(d, d), dimension_numbers=("NCHW", "OIHW", "NCHW"))
        x = x + b.reshape(1, -1, 1, 1)
        x = jnp.where(x >= 0, x, a * x)
    return x


if __name__ == "__main__":
    key = jax.random.PRNGKey(0)
    key, xk, pk = jax.random.split(key, 3)

    # Small config consistent with the module's __init__ signature.
    channels = [4, 8, 1]
    k_sizes = [3, 3]
    dilation = [1, 2]
    padding = [1, 2]

    block = LogitBlockPallas(channels, k_sizes, dilation, padding, pk)

    x = jax.random.normal(xk, (2, 4, 16, 16), jnp.float32)  # NCHW

    y = jax.block_until_ready(block(x))
    y_ref = jax.block_until_ready(_reference_forward(x, block))

    assert y.shape == y_ref.shape == (2, 1, 16, 16), y.shape
    # Kernel uses bf16 MXU operands (f32 accumulation); tolerance sized for
    # bf16 rounding of the matmul operands (observed error << 1e-2).
    assert jnp.allclose(y, y_ref, rtol=2e-2, atol=2e-2), (
        float(jnp.max(jnp.abs(y - y_ref))))

    print("KERNEL_OK")
</pallas_src>

<mosaic_0001>
module attributes {stable_mosaic.version = 11 : i64} {
  func.func @_logit_block_kernel(%arg0: i32, %arg1: memref<4x512xf32, #tpu.memory_space<vmem>>, %arg2: memref<2x512xf32, #tpu.memory_space<vmem>>, %arg3: memref<2xf32, #tpu.memory_space<smem>>, %arg4: memref<9x8x4xf32, #tpu.memory_space<vmem>>, %arg5: memref<8x1xf32, #tpu.memory_space<vmem>>, %arg6: memref<9x1x8xf32, #tpu.memory_space<vmem>>, %arg7: memref<1x1xf32, #tpu.memory_space<vmem>>, %arg8: memref<1x512xf32, #tpu.memory_space<vmem>>) attributes {dimension_semantics = [#tpu.dimension_semantics<parallel>], iteration_bounds = array<i64: 2>, scalar_prefetch = 0 : i64, scratch_operands = 0 : i64, tpu.core_type = #tpu.core_type<tc>, window_params = [{transform_indices = @transform_0, window_bounds = array<i64: 4, 512>}, {pipeline_mode = #tpu.pipeline_mode<synchronous>, transform_indices = @transform_1, window_bounds = array<i64: 2, 512>}, {transform_indices = @transform_2, window_bounds = array<i64: 2>}, {pipeline_mode = #tpu.pipeline_mode<synchronous>, transform_indices = @transform_3, window_bounds = array<i64: 9, 8, 4>}, {pipeline_mode = #tpu.pipeline_mode<synchronous>, transform_indices = @transform_4, window_bounds = array<i64: 8, 1>}, {pipeline_mode = #tpu.pipeline_mode<synchronous>, transform_indices = @transform_5, window_bounds = array<i64: 9, 1, 8>}, {pipeline_mode = #tpu.pipeline_mode<synchronous>, transform_indices = @transform_6, window_bounds = array<i64: 1, 1>}, {transform_indices = @transform_7, window_bounds = array<i64: 1, 512>}]} {
    %c0 = arith.constant 0 : index
    %c0_0 = arith.constant 0 : index
    %0 = vector.load %arg1[%c0, %c0_0] : memref<4x512xf32, #tpu.memory_space<vmem>>, vector<4x512xf32>
    %c0_1 = arith.constant 0 : index
    %c0_2 = arith.constant 0 : index
    %1 = vector.load %arg2[%c0_1, %c0_2] : memref<2x512xf32, #tpu.memory_space<vmem>>, vector<2x512xf32>
    %2 = arith.truncf %0 : vector<4x512xf32> to vector<4x512xbf16>
    %cst = arith.constant 0.000000e+00 : f32
    %3 = vector.broadcast %cst : f32 to vector<8x512xf32>
    %4 = vector.extract_strided_slice %2 {offsets = [0, 491], sizes = [4, 21], strides = [1, 1]} : vector<4x512xbf16> to vector<4x21xbf16>
    %5 = vector.extract_strided_slice %2 {offsets = [0, 0], sizes = [4, 491], strides = [1, 1]} : vector<4x512xbf16> to vector<4x491xbf16>
    %6 = tpu.concatenate %4, %5 in 1 : vector<4x21xbf16>, vector<4x491xbf16> -> vector<4x512xbf16>
    %c0_3 = arith.constant 0 : index
    %c0_4 = arith.constant 0 : index
    %c0_5 = arith.constant 0 : index
    %7 = vector.load %arg4[%c0_3, %c0_4, %c0_5] : memref<9x8x4xf32, #tpu.memory_space<vmem>>, vector<1x8x4xf32>
    %8 = vector.shape_cast %7 : vector<1x8x4xf32> to vector<8x4xf32>
    %9 = arith.truncf %8 : vector<8x4xf32> to vector<8x4xbf16>
    %cst_6 = arith.constant dense<0.000000e+00> : vector<8x512xf32>
    %10 = tpu.matmul %9, %6, %cst_6 {dimension_numbers = #tpu.dot_dimension_numbers<[1], [0], [0], [1], [0, 0, 1, 1], [], []>} : vector<8x4xbf16>, vector<4x512xbf16>, vector<8x512xf32> -> vector<8x512xf32>
    %11 = arith.addf %3, %10 : vector<8x512xf32>
    %12 = vector.extract_strided_slice %2 {offsets = [0, 492], sizes = [4, 20], strides = [1, 1]} : vector<4x512xbf16> to vector<4x20xbf16>
    %13 = vector.extract_strided_slice %2 {offsets = [0, 0], sizes = [4, 492], strides = [1, 1]} : vector<4x512xbf16> to vector<4x492xbf16>
    %14 = tpu.concatenate %12, %13 in 1 : vector<4x20xbf16>, vector<4x492xbf16> -> vector<4x512xbf16>
    %c1 = arith.constant 1 : index
    %c0_7 = arith.constant 0 : index
    %c0_8 = arith.constant 0 : index
    %15 = vector.load %arg4[%c1, %c0_7, %c0_8] : memref<9x8x4xf32, #tpu.memory_space<vmem>>, vector<1x8x4xf32>
    %16 = vector.shape_cast %15 : vector<1x8x4xf32> to vector<8x4xf32>
    %17 = arith.truncf %16 : vector<8x4xf32> to vector<8x4xbf16>
    %cst_9 = arith.constant dense<0.000000e+00> : vector<8x512xf32>
    %18 = tpu.matmul %17, %14, %cst_9 {dimension_numbers = #tpu.dot_dimension_numbers<[1], [0], [0], [1], [0, 0, 1, 1], [], []>} : vector<8x4xbf16>, vector<4x512xbf16>, vector<8x512xf32> -> vector<8x512xf32>
    %19 = arith.addf %11, %18 : vector<8x512xf32>
    %20 = vector.extract_strided_slice %2 {offsets = [0, 493], sizes = [4, 19], strides = [1, 1]} : vector<4x512xbf16> to vector<4x19xbf16>
    %21 = vector.extract_strided_slice %2 {offsets = [0, 0], sizes = [4, 493], strides = [1, 1]} : vector<4x512xbf16> to vector<4x493xbf16>
    %22 = tpu.concatenate %20, %21 in 1 : vector<4x19xbf16>, vector<4x493xbf16> -> vector<4x512xbf16>
    %c2 = arith.constant 2 : index
    %c0_10 = arith.constant 0 : index
    %c0_11 = arith.constant 0 : index
    %23 = vector.load %arg4[%c2, %c0_10, %c0_11] : memref<9x8x4xf32, #tpu.memory_space<vmem>>, vector<1x8x4xf32>
    %24 = vector.shape_cast %23 : vector<1x8x4xf32> to vector<8x4xf32>
    %25 = arith.truncf %24 : vector<8x4xf32> to vector<8x4xbf16>
    %cst_12 = arith.constant dense<0.000000e+00> : vector<8x512xf32>
    %26 = tpu.matmul %25, %22, %cst_12 {dimension_numbers = #tpu.dot_dimension_numbers<[1], [0], [0], [1], [0, 0, 1, 1], [], []>} : vector<8x4xbf16>, vector<4x512xbf16>, vector<8x512xf32> -> vector<8x512xf32>
    %27 = arith.addf %19, %26 : vector<8x512xf32>
    %28 = vector.extract_strided_slice %2 {offsets = [0, 511], sizes = [4, 1], strides = [1, 1]} : vector<4x512xbf16> to vector<4x1xbf16>
    %29 = vector.extract_strided_slice %2 {offsets = [0, 0], sizes = [4, 511], strides = [1, 1]} : vector<4x512xbf16> to vector<4x511xbf16>
    %30 = tpu.concatenate %28, %29 in 1 : vector<4x1xbf16>, vector<4x511xbf16> -> vector<4x512xbf16>
    %c3 = arith.constant 3 : index
    %c0_13 = arith.constant 0 : index
    %c0_14 = arith.constant 0 : index
    %31 = vector.load %arg4[%c3, %c0_13, %c0_14] : memref<9x8x4xf32, #tpu.memory_space<vmem>>, vector<1x8x4xf32>
    %32 = vector.shape_cast %31 : vector<1x8x4xf32> to vector<8x4xf32>
    %33 = arith.truncf %32 : vector<8x4xf32> to vector<8x4xbf16>
    %cst_15 = arith.constant dense<0.000000e+00> : vector<8x512xf32>
    %34 = tpu.matmul %33, %30, %cst_15 {dimension_numbers = #tpu.dot_dimension_numbers<[1], [0], [0], [1], [0, 0, 1, 1], [], []>} : vector<8x4xbf16>, vector<4x512xbf16>, vector<8x512xf32> -> vector<8x512xf32>
    %35 = arith.addf %27, %34 : vector<8x512xf32>
    %c4 = arith.constant 4 : index
    %c0_16 = arith.constant 0 : index
    %c0_17 = arith.constant 0 : index
    %36 = vector.load %arg4[%c4, %c0_16, %c0_17] : memref<9x8x4xf32, #tpu.memory_space<vmem>>, vector<1x8x4xf32>
    %37 = vector.shape_cast %36 : vector<1x8x4xf32> to vector<8x4xf32>
    %38 = arith.truncf %37 : vector<8x4xf32> to vector<8x4xbf16>
    %cst_18 = arith.constant dense<0.000000e+00> : vector<8x512xf32>
    %39 = tpu.matmul %38, %2, %cst_18 {dimension_numbers = #tpu.dot_dimension_numbers<[1], [0], [0], [1], [0, 0, 1, 1], [], []>} : vector<8x4xbf16>, vector<4x512xbf16>, vector<8x512xf32> -> vector<8x512xf32>
    %40 = arith.addf %35, %39 : vector<8x512xf32>
    %41 = vector.extract_strided_slice %2 {offsets = [0, 1], sizes = [4, 511], strides = [1, 1]} : vector<4x512xbf16> to vector<4x511xbf16>
    %42 = vector.extract_strided_slice %2 {offsets = [0, 0], sizes = [4, 1], strides = [1, 1]} : vector<4x512xbf16> to vector<4x1xbf16>
    %43 = tpu.concatenate %41, %42 in 1 : vector<4x511xbf16>, vector<4x1xbf16> -> vector<4x512xbf16>
    %c5 = arith.constant 5 : index
    %c0_19 = arith.constant 0 : index
    %c0_20 = arith.constant 0 : index
    %44 = vector.load %arg4[%c5, %c0_19, %c0_20] : memref<9x8x4xf32, #tpu.memory_space<vmem>>, vector<1x8x4xf32>
    %45 = vector.shape_cast %44 : vector<1x8x4xf32> to vector<8x4xf32>
    %46 = arith.truncf %45 : vector<8x4xf32> to vector<8x4xbf16>
    %cst_21 = arith.constant dense<0.000000e+00> : vector<8x512xf32>
    %47 = tpu.matmul %46, %43, %cst_21 {dimension_numbers = #tpu.dot_dimension_numbers<[1], [0], [0], [1], [0, 0, 1, 1], [], []>} : vector<8x4xbf16>, vector<4x512xbf16>, vector<8x512xf32> -> vector<8x512xf32>
    %48 = arith.addf %40, %47 : vector<8x512xf32>
    %49 = vector.extract_strided_slice %2 {offsets = [0, 19], sizes = [4, 493], strides = [1, 1]} : vector<4x512xbf16> to vector<4x493xbf16>
    %50 = vector.extract_strided_slice %2 {offsets = [0, 0], sizes = [4, 19], strides = [1, 1]} : vector<4x512xbf16> to vector<4x19xbf16>
    %51 = tpu.concatenate %49, %50 in 1 : vector<4x493xbf16>, vector<4x19xbf16> -> vector<4x512xbf16>
    %c6 = arith.constant 6 : index
    %c0_22 = arith.constant 0 : index
    %c0_23 = arith.constant 0 : index
    %52 = vector.load %arg4[%c6, %c0_22, %c0_23] : memref<9x8x4xf32, #tpu.memory_space<vmem>>, vector<1x8x4xf32>
    %53 = vector.shape_cast %52 : vector<1x8x4xf32> to vector<8x4xf32>
    %54 = arith.truncf %53 : vector<8x4xf32> to vector<8x4xbf16>
    %cst_24 = arith.constant dense<0.000000e+00> : vector<8x512xf32>
    %55 = tpu.matmul %54, %51, %cst_24 {dimension_numbers = #tpu.dot_dimension_numbers<[1], [0], [0], [1], [0, 0, 1, 1], [], []>} : vector<8x4xbf16>, vector<4x512xbf16>, vector<8x512xf32> -> vector<8x512xf32>
    %56 = arith.addf %48, %55 : vector<8x512xf32>
    %57 = vector.extract_strided_slice %2 {offsets = [0, 20], sizes = [4, 492], strides = [1, 1]} : vector<4x512xbf16> to vector<4x492xbf16>
    %58 = vector.extract_strided_slice %2 {offsets = [0, 0], sizes = [4, 20], strides = [1, 1]} : vector<4x512xbf16> to vector<4x20xbf16>
    %59 = tpu.concatenate %57, %58 in 1 : vector<4x492xbf16>, vector<4x20xbf16> -> vector<4x512xbf16>
    %c7 = arith.constant 7 : index
    %c0_25 = arith.constant 0 : index
    %c0_26 = arith.constant 0 : index
    %60 = vector.load %arg4[%c7, %c0_25, %c0_26] : memref<9x8x4xf32, #tpu.memory_space<vmem>>, vector<1x8x4xf32>
    %61 = vector.shape_cast %60 : vector<1x8x4xf32> to vector<8x4xf32>
    %62 = arith.truncf %61 : vector<8x4xf32> to vector<8x4xbf16>
    %cst_27 = arith.constant dense<0.000000e+00> : vector<8x512xf32>
    %63 = tpu.matmul %62, %59, %cst_27 {dimension_numbers = #tpu.dot_dimension_numbers<[1], [0], [0], [1], [0, 0, 1, 1], [], []>} : vector<8x4xbf16>, vector<4x512xbf16>, vector<8x512xf32> -> vector<8x512xf32>
    %64 = arith.addf %56, %63 : vector<8x512xf32>
    %65 = vector.extract_strided_slice %2 {offsets = [0, 21], sizes = [4, 491], strides = [1, 1]} : vector<4x512xbf16> to vector<4x491xbf16>
    %66 = vector.extract_strided_slice %2 {offsets = [0, 0], sizes = [4, 21], strides = [1, 1]} : vector<4x512xbf16> to vector<4x21xbf16>
    %67 = tpu.concatenate %65, %66 in 1 : vector<4x491xbf16>, vector<4x21xbf16> -> vector<4x512xbf16>
    %c8 = arith.constant 8 : index
    %c0_28 = arith.constant 0 : index
    %c0_29 = arith.constant 0 : index
    %68 = vector.load %arg4[%c8, %c0_28, %c0_29] : memref<9x8x4xf32, #tpu.memory_space<vmem>>, vector<1x8x4xf32>
    %69 = vector.shape_cast %68 : vector<1x8x4xf32> to vector<8x4xf32>
    %70 = arith.truncf %69 : vector<8x4xf32> to vector<8x4xbf16>
    %cst_30 = arith.constant dense<0.000000e+00> : vector<8x512xf32>
    %71 = tpu.matmul %70, %67, %cst_30 {dimension_numbers = #tpu.dot_dimension_numbers<[1], [0], [0], [1], [0, 0, 1, 1], [], []>} : vector<8x4xbf16>, vector<4x512xbf16>, vector<8x512xf32> -> vector<8x512xf32>
    %72 = arith.addf %64, %71 : vector<8x512xf32>
    %c0_31 = arith.constant 0 : index
    %c0_32 = arith.constant 0 : index
    %73 = vector.load %arg5[%c0_31, %c0_32] : memref<8x1xf32, #tpu.memory_space<vmem>>, vector<8x1xf32>
    %74 = vector.broadcast %73 : vector<8x1xf32> to vector<8x512xf32>
    %75 = arith.addf %72, %74 : vector<8x512xf32>
    %c0_33 = arith.constant 0 : index
    %76 = memref.load %arg3[%c0_33] : memref<2xf32, #tpu.memory_space<smem>>
    %cst_34 = arith.constant 0.000000e+00 : f32
    %77 = vector.broadcast %cst_34 : f32 to vector<8x512xf32>
    %78 = arith.cmpf oge, %75, %77 : vector<8x512xf32>
    %79 = vector.broadcast %76 : f32 to vector<8x512xf32>
    %80 = arith.mulf %79, %75 : vector<8x512xf32>
    %81 = arith.select %78, %75, %80 : vector<8x512xi1>, vector<8x512xf32>
    %82 = vector.extract_strided_slice %1 {offsets = [0, 0], sizes = [1, 512], strides = [1, 1]} : vector<2x512xf32> to vector<1x512xf32>
    %83 = vector.broadcast %82 : vector<1x512xf32> to vector<8x512xf32>
    %84 = arith.mulf %81, %83 : vector<8x512xf32>
    %85 = arith.truncf %84 : vector<8x512xf32> to vector<8x512xbf16>
    %cst_35 = arith.constant 0.000000e+00 : f32
    %86 = vector.broadcast %cst_35 : f32 to vector<1x512xf32>
    %87 = vector.extract_strided_slice %85 {offsets = [0, 470], sizes = [8, 42], strides = [1, 1]} : vector<8x512xbf16> to vector<8x42xbf16>
    %88 = vector.extract_strided_slice %85 {offsets = [0, 0], sizes = [8, 470], strides = [1, 1]} : vector<8x512xbf16> to vector<8x470xbf16>
    %89 = tpu.concatenate %87, %88 in 1 : vector<8x42xbf16>, vector<8x470xbf16> -> vector<8x512xbf16>
    %c0_36 = arith.constant 0 : index
    %c0_37 = arith.constant 0 : index
    %c0_38 = arith.constant 0 : index
    %90 = vector.load %arg6[%c0_36, %c0_37, %c0_38] : memref<9x1x8xf32, #tpu.memory_space<vmem>>, vector<1x1x8xf32>
    %91 = vector.shape_cast %90 : vector<1x1x8xf32> to vector<1x8xf32>
    %92 = arith.truncf %91 : vector<1x8xf32> to vector<1x8xbf16>
    %cst_39 = arith.constant dense<0.000000e+00> : vector<1x512xf32>
    %93 = tpu.matmul %92, %89, %cst_39 {dimension_numbers = #tpu.dot_dimension_numbers<[1], [0], [0], [1], [0, 0, 1, 1], [], []>} : vector<1x8xbf16>, vector<8x512xbf16>, vector<1x512xf32> -> vector<1x512xf32>
    %94 = arith.addf %86, %93 : vector<1x512xf32>
    %95 = vector.extract_strided_slice %85 {offsets = [0, 472], sizes = [8, 40], strides = [1, 1]} : vector<8x512xbf16> to vector<8x40xbf16>
    %96 = vector.extract_strided_slice %85 {offsets = [0, 0], sizes = [8, 472], strides = [1, 1]} : vector<8x512xbf16> to vector<8x472xbf16>
    %97 = tpu.concatenate %95, %96 in 1 : vector<8x40xbf16>, vector<8x472xbf16> -> vector<8x512xbf16>
    %c1_40 = arith.constant 1 : index
    %c0_41 = arith.constant 0 : index
    %c0_42 = arith.constant 0 : index
    %98 = vector.load %arg6[%c1_40, %c0_41, %c0_42] : memref<9x1x8xf32, #tpu.memory_space<vmem>>, vector<1x1x8xf32>
    %99 = vector.shape_cast %98 : vector<1x1x8xf32> to vector<1x8xf32>
    %100 = arith.truncf %99 : vector<1x8xf32> to vector<1x8xbf16>
    %cst_43 = arith.constant dense<0.000000e+00> : vector<1x512xf32>
    %101 = tpu.matmul %100, %97, %cst_43 {dimension_numbers = #tpu.dot_dimension_numbers<[1], [0], [0], [1], [0, 0, 1, 1], [], []>} : vector<1x8xbf16>, vector<8x512xbf16>, vector<1x512xf32> -> vector<1x512xf32>
    %102 = arith.addf %94, %101 : vector<1x512xf32>
    %103 = vector.extract_strided_slice %85 {offsets = [0, 474], sizes = [8, 38], strides = [1, 1]} : vector<8x512xbf16> to vector<8x38xbf16>
    %104 = vector.extract_strided_slice %85 {offsets = [0, 0], sizes = [8, 474], strides = [1, 1]} : vector<8x512xbf16> to vector<8x474xbf16>
    %105 = tpu.concatenate %103, %104 in 1 : vector<8x38xbf16>, vector<8x474xbf16> -> vector<8x512xbf16>
    %c2_44 = arith.constant 2 : index
    %c0_45 = arith.constant 0 : index
    %c0_46 = arith.constant 0 : index
    %106 = vector.load %arg6[%c2_44, %c0_45, %c0_46] : memref<9x1x8xf32, #tpu.memory_space<vmem>>, vector<1x1x8xf32>
    %107 = vector.shape_cast %106 : vector<1x1x8xf32> to vector<1x8xf32>
    %108 = arith.truncf %107 : vector<1x8xf32> to vector<1x8xbf16>
    %cst_47 = arith.constant dense<0.000000e+00> : vector<1x512xf32>
    %109 = tpu.matmul %108, %105, %cst_47 {dimension_numbers = #tpu.dot_dimension_numbers<[1], [0], [0], [1], [0, 0, 1, 1], [], []>} : vector<1x8xbf16>, vector<8x512xbf16>, vector<1x512xf32> -> vector<1x512xf32>
    %110 = arith.addf %102, %109 : vector<1x512xf32>
    %111 = vector.extract_strided_slice %85 {offsets = [0, 510], sizes = [8, 2], strides = [1, 1]} : vector<8x512xbf16> to vector<8x2xbf16>
    %112 = vector.extract_strided_slice %85 {offsets = [0, 0], sizes = [8, 510], strides = [1, 1]} : vector<8x512xbf16> to vector<8x510xbf16>
    %113 = tpu.concatenate %111, %112 in 1 : vector<8x2xbf16>, vector<8x510xbf16> -> vector<8x512xbf16>
    %c3_48 = arith.constant 3 : index
    %c0_49 = arith.constant 0 : index
    %c0_50 = arith.constant 0 : index
    %114 = vector.load %arg6[%c3_48, %c0_49, %c0_50] : memref<9x1x8xf32, #tpu.memory_space<vmem>>, vector<1x1x8xf32>
    %115 = vector.shape_cast %114 : vector<1x1x8xf32> to vector<1x8xf32>
    %116 = arith.truncf %115 : vector<1x8xf32> to vector<1x8xbf16>
    %cst_51 = arith.constant dense<0.000000e+00> : vector<1x512xf32>
    %117 = tpu.matmul %116, %113, %cst_51 {dimension_numbers = #tpu.dot_dimension_numbers<[1], [0], [0], [1], [0, 0, 1, 1], [], []>} : vector<1x8xbf16>, vector<8x512xbf16>, vector<1x512xf32> -> vector<1x512xf32>
    %118 = arith.addf %110, %117 : vector<1x512xf32>
    %c4_52 = arith.constant 4 : index
    %c0_53 = arith.constant 0 : index
    %c0_54 = arith.constant 0 : index
    %119 = vector.load %arg6[%c4_52, %c0_53, %c0_54] : memref<9x1x8xf32, #tpu.memory_space<vmem>>, vector<1x1x8xf32>
    %120 = vector.shape_cast %119 : vector<1x1x8xf32> to vector<1x8xf32>
    %121 = arith.truncf %120 : vector<1x8xf32> to vector<1x8xbf16>
    %cst_55 = arith.constant dense<0.000000e+00> : vector<1x512xf32>
    %122 = tpu.matmul %121, %85, %cst_55 {dimension_numbers = #tpu.dot_dimension_numbers<[1], [0], [0], [1], [0, 0, 1, 1], [], []>} : vector<1x8xbf16>, vector<8x512xbf16>, vector<1x512xf32> -> vector<1x512xf32>
    %123 = arith.addf %118, %122 : vector<1x512xf32>
    %124 = vector.extract_strided_slice %85 {offsets = [0, 2], sizes = [8, 510], strides = [1, 1]} : vector<8x512xbf16> to vector<8x510xbf16>
    %125 = vector.extract_strided_slice %85 {offsets = [0, 0], sizes = [8, 2], strides = [1, 1]} : vector<8x512xbf16> to vector<8x2xbf16>
    %126 = tpu.concatenate %124, %125 in 1 : vector<8x510xbf16>, vector<8x2xbf16> -> vector<8x512xbf16>
    %c5_56 = arith.constant 5 : index
    %c0_57 = arith.constant 0 : index
    %c0_58 = arith.constant 0 : index
    %127 = vector.load %arg6[%c5_56, %c0_57, %c0_58] : memref<9x1x8xf32, #tpu.memory_space<vmem>>, vector<1x1x8xf32>
    %128 = vector.shape_cast %127 : vector<1x1x8xf32> to vector<1x8xf32>
    %129 = arith.truncf %128 : vector<1x8xf32> to vector<1x8xbf16>
    %cst_59 = arith.constant dense<0.000000e+00> : vector<1x512xf32>
    %130 = tpu.matmul %129, %126, %cst_59 {dimension_numbers = #tpu.dot_dimension_numbers<[1], [0], [0], [1], [0, 0, 1, 1], [], []>} : vector<1x8xbf16>, vector<8x512xbf16>, vector<1x512xf32> -> vector<1x512xf32>
    %131 = arith.addf %123, %130 : vector<1x512xf32>
    %132 = vector.extract_strided_slice %85 {offsets = [0, 38], sizes = [8, 474], strides = [1, 1]} : vector<8x512xbf16> to vector<8x474xbf16>
    %133 = vector.extract_strided_slice %85 {offsets = [0, 0], sizes = [8, 38], strides = [1, 1]} : vector<8x512xbf16> to vector<8x38xbf16>
    %134 = tpu.concatenate %132, %133 in 1 : vector<8x474xbf16>, vector<8x38xbf16> -> vector<8x512xbf16>
    %c6_60 = arith.constant 6 : index
    %c0_61 = arith.constant 0 : index
    %c0_62 = arith.constant 0 : index
    %135 = vector.load %arg6[%c6_60, %c0_61, %c0_62] : memref<9x1x8xf32, #tpu.memory_space<vmem>>, vector<1x1x8xf32>
    %136 = vector.shape_cast %135 : vector<1x1x8xf32> to vector<1x8xf32>
    %137 = arith.truncf %136 : vector<1x8xf32> to vector<1x8xbf16>
    %cst_63 = arith.constant dense<0.000000e+00> : vector<1x512xf32>
    %138 = tpu.matmul %137, %134, %cst_63 {dimension_numbers = #tpu.dot_dimension_numbers<[1], [0], [0], [1], [0, 0, 1, 1], [], []>} : vector<1x8xbf16>, vector<8x512xbf16>, vector<1x512xf32> -> vector<1x512xf32>
    %139 = arith.addf %131, %138 : vector<1x512xf32>
    %140 = vector.extract_strided_slice %85 {offsets = [0, 40], sizes = [8, 472], strides = [1, 1]} : vector<8x512xbf16> to vector<8x472xbf16>
    %141 = vector.extract_strided_slice %85 {offsets = [0, 0], sizes = [8, 40], strides = [1, 1]} : vector<8x512xbf16> to vector<8x40xbf16>
    %142 = tpu.concatenate %140, %141 in 1 : vector<8x472xbf16>, vector<8x40xbf16> -> vector<8x512xbf16>
    %c7_64 = arith.constant 7 : index
    %c0_65 = arith.constant 0 : index
    %c0_66 = arith.constant 0 : index
    %143 = vector.load %arg6[%c7_64, %c0_65, %c0_66] : memref<9x1x8xf32, #tpu.memory_space<vmem>>, vector<1x1x8xf32>
    %144 = vector.shape_cast %143 : vector<1x1x8xf32> to vector<1x8xf32>
    %145 = arith.truncf %144 : vector<1x8xf32> to vector<1x8xbf16>
    %cst_67 = arith.constant dense<0.000000e+00> : vector<1x512xf32>
    %146 = tpu.matmul %145, %142, %cst_67 {dimension_numbers = #tpu.dot_dimension_numbers<[1], [0], [0], [1], [0, 0, 1, 1], [], []>} : vector<1x8xbf16>, vector<8x512xbf16>, vector<1x512xf32> -> vector<1x512xf32>
    %147 = arith.addf %139, %146 : vector<1x512xf32>
    %148 = vector.extract_strided_slice %85 {offsets = [0, 42], sizes = [8, 470], strides = [1, 1]} : vector<8x512xbf16> to vector<8x470xbf16>
    %149 = vector.extract_strided_slice %85 {offsets = [0, 0], sizes = [8, 42], strides = [1, 1]} : vector<8x512xbf16> to vector<8x42xbf16>
    %150 = tpu.concatenate %148, %149 in 1 : vector<8x470xbf16>, vector<8x42xbf16> -> vector<8x512xbf16>
    %c8_68 = arith.constant 8 : index
    %c0_69 = arith.constant 0 : index
    %c0_70 = arith.constant 0 : index
    %151 = vector.load %arg6[%c8_68, %c0_69, %c0_70] : memref<9x1x8xf32, #tpu.memory_space<vmem>>, vector<1x1x8xf32>
    %152 = vector.shape_cast %151 : vector<1x1x8xf32> to vector<1x8xf32>
    %153 = arith.truncf %152 : vector<1x8xf32> to vector<1x8xbf16>
    %cst_71 = arith.constant dense<0.000000e+00> : vector<1x512xf32>
    %154 = tpu.matmul %153, %150, %cst_71 {dimension_numbers = #tpu.dot_dimension_numbers<[1], [0], [0], [1], [0, 0, 1, 1], [], []>} : vector<1x8xbf16>, vector<8x512xbf16>, vector<1x512xf32> -> vector<1x512xf32>
    %155 = arith.addf %147, %154 : vector<1x512xf32>
    %c0_72 = arith.constant 0 : index
    %c0_73 = arith.constant 0 : index
    %156 = vector.load %arg7[%c0_72, %c0_73] : memref<1x1xf32, #tpu.memory_space<vmem>>, vector<1x1xf32>
    %157 = vector.broadcast %156 : vector<1x1xf32> to vector<1x512xf32>
    %158 = arith.addf %155, %157 : vector<1x512xf32>
    %c1_74 = arith.constant 1 : index
    %159 = memref.load %arg3[%c1_74] : memref<2xf32, #tpu.memory_space<smem>>
    %cst_75 = arith.constant 0.000000e+00 : f32
    %160 = vector.broadcast %cst_75 : f32 to vector<1x512xf32>
    %161 = arith.cmpf oge, %158, %160 : vector<1x512xf32>
    %162 = vector.broadcast %159 : f32 to vector<1x512xf32>
    %163 = arith.mulf %162, %158 : vector<1x512xf32>
    %164 = arith.select %161, %158, %163 : vector<1x512xi1>, vector<1x512xf32>
    %165 = vector.extract_strided_slice %1 {offsets = [1, 0], sizes = [1, 512], strides = [1, 1]} : vector<2x512xf32> to vector<1x512xf32>
    %166 = arith.mulf %164, %165 : vector<1x512xf32>
    %c0_76 = arith.constant 0 : index
    %c0_77 = arith.constant 0 : index
    %167 = vector.load %arg8[%c0_76, %c0_77] : memref<1x512xf32, #tpu.memory_space<vmem>>, vector<1x512xf32>
    tpu.vector_store %arg8[%c0_76, %c0_77], %166 {strides = array<i32>} : memref<1x512xf32, #tpu.memory_space<vmem>>, vector<1x512xf32>,
    return
  }
  func.func @transform_0(%arg0: i32) -> (i32, i32) {
    %c0_i32 = arith.constant 0 : i32
    %c0_i32_0 = arith.constant 0 : i32
    return %c0_i32, %arg0 : i32, i32
  }
  func.func @transform_1(%arg0: i32) -> (i32, i32) {
    %c0_i32 = arith.constant 0 : i32
    %c0_i32_0 = arith.constant 0 : i32
    %c0_i32_1 = arith.constant 0 : i32
    return %c0_i32, %c0_i32_0 : i32, i32
  }
  func.func @transform_2(%arg0: i32) -> i32 {
    %c0_i32 = arith.constant 0 : i32
    %c0_i32_0 = arith.constant 0 : i32
    return %c0_i32 : i32
  }
  func.func @transform_3(%arg0: i32) -> (i32, i32, i32) {
    %c0_i32 = arith.constant 0 : i32
    %c0_i32_0 = arith.constant 0 : i32
    %c0_i32_1 = arith.constant 0 : i32
    %c0_i32_2 = arith.constant 0 : i32
    return %c0_i32, %c0_i32_0, %c0_i32_1 : i32, i32, i32
  }
  func.func @transform_4(%arg0: i32) -> (i32, i32) {
    %c0_i32 = arith.constant 0 : i32
    %c0_i32_0 = arith.constant 0 : i32
    %c0_i32_1 = arith.constant 0 : i32
    return %c0_i32, %c0_i32_0 : i32, i32
  }
  func.func @transform_5(%arg0: i32) -> (i32, i32, i32) {
    %c0_i32 = arith.constant 0 : i32
    %c0_i32_0 = arith.constant 0 : i32
    %c0_i32_1 = arith.constant 0 : i32
    %c0_i32_2 = arith.constant 0 : i32
    return %c0_i32, %c0_i32_0, %c0_i32_1 : i32, i32, i32
  }
  func.func @transform_6(%arg0: i32) -> (i32, i32) {
    %c0_i32 = arith.constant 0 : i32
    %c0_i32_0 = arith.constant 0 : i32
    %c0_i32_1 = arith.constant 0 : i32
    return %c0_i32, %c0_i32_0 : i32, i32
  }
  func.func @transform_7(%arg0: i32) -> (i32, i32) {
    %c0_i32 = arith.constant 0 : i32
    %c0_i32_0 = arith.constant 0 : i32
    return %c0_i32, %arg0 : i32, i32
  }
}

</mosaic_0001>

<bundles_post_ra>
// kernel: tpu_custom_call.1
= control target key start
LH: loop header
LB: loop body
LE: loop exit
PB: predicated region body
PF: predicated region fallthrough
CT: control target
= control target key end

     0   :  { %s2818_s0 = inlined_call_operand.vmem [shape: f32[4,1024], index: 0, kind: input, shape index: {}]   ;;  %s2819_s1 = inlined_call_operand.vmem [shape: f32[2,512], index: 1, kind: input, shape index: {}]   ;;  %s2820_s2 = inlined_call_operand.vmem [shape: f32[2], index: 2, kind: input, shape index: {}]   ;;  %s2821_s3 = inlined_call_operand.vmem [shape: f32[9,8,4], index: 3, kind: input, shape index: {}]   ;;  %s2822_s4 = inlined_call_operand.vmem [shape: f32[8,1], index: 4, kind: input, shape index: {}]   ;;  %s2823_s5 = inlined_call_operand.vmem [shape: f32[9,1,8], index: 5, kind: input, shape index: {}]   ;;  %s2824_s6 = inlined_call_operand.<no memory space> [shape: f32[1,1], index: 6, kind: input, shape index: {}]   ;;  %s2825_s7 = inlined_call_operand.hbm [shape: f32[1,1024], index: 7, kind: output, shape index: {}]  }
   0x1   :  { %v12_v0 = vstv %s2824_s6 }
   0x2   :  { %13 = vst [vmem:[#allocation2] sm:$0x1] %v12_v0 }
   0x3   :  { %14 = vsyncpa [#allocation5], 0 }
   0x4   :  { %15 = vsyncpa [#allocation4], 0 }
   0x5   :  { %17 = vsyncpa [#allocation4 + $0x1], 0  ;;  %s2393_s26 = smov 0   ;;  %s2395_s27 = smov 0  }
   0x6   :  { %s2397_s28 = smov 0   ;;  %s2399_s29 = smov 0  }
   0x7 LB: > { %s2077_s6 = sadd.s32 4294967295, %s2330_s29   ;;  %s2078_s30 = sadd.s32 4294967294, %s2330_s29   ;;  %s2330_s29 = sphi %s2399_s29, %s2831_s29   ;;  %s2326_s28 = sphi %s2397_s28, %s2830_s28   ;;  %s2322_s27 = sphi %s2395_s27, %s2829_s27   ;;  %s2318_s26 = sphi %s2393_s26, %s2828_s26  }
   0x8   : > { %s2416_s8 = sadd.s32 1, %s2330_s29   ;;  %s182_s9 = sadd.s32 1, %s2326_s28 }
   0x9   : > { %s179_s10 = ssub.s32 %s2330_s29, %s2416_s8  ;;  %p192_p0 = scmp.ne.s32.totalorder %s2326_s28, %s2322_s27 }
   0xa   : > { %p180_p1 = scmp.eq.s32.totalorder %s179_s10, 0  ;;  %p193_p2 = scmp.eq.s32.totalorder %s2077_s6, 1 }
   0xb   : > { %p198_p3 = scmp.ne.s32.totalorder %s2322_s27, %s2318_s26  ;;  %p199_p4 = scmp.eq.s32.totalorder %s2078_s30, 1 }
   0xc   : > { %s2426_s11 = scalar_select %p180_p1, %s2326_s28, %s182_s9  }
   0xd   : > { %p2428_p5 = por %p193_p2, %p192_p0  ;;  %p2432_p6 = por %p199_p4, %p198_p3 }
   0xe   : > { %p2079_p7 = scmp.ge.s32.totalorder %s2330_s29, 1  ;;  %p206_p8 = scmp.lt.s32.totalorder %s2330_s29, 3 }
   0xf   : > { %p2194_p9 = scmp.eq.s32.totalorder %s2077_s6, 0  ;;  %s221_s16 = sshll.u32 %s2820_s2, 4  ;;  %s222_s16 = int_to_ptr.vmem [resolvable:$true] %s221_s16 }
  0x10   : > { %p207_p10 = pnand %p2079_p7, %p206_p8  ;;  %s2332_s17 = smov [#allocation3]  }
  0x12   : > { %p2186_p11 = pneg %p207_p10  ;;  %255 = sbr.rel (%p207_p10) target bundleno = 851 (0x353), region = 48 }
  0x14   : > { %p2187_p12 = pnand %p2194_p9, %p2186_p11 }
  0x16   : > { %2189 = dma.vmem_to_smem (!%p2187_p12), %s222_s16, 16, %s2332_s17, [#allocation5]  }
  0x17   : > { %2309 = dma.done.wait (%p2194_p9), [#allocation5], 16  }
  0x18   : > { %2311 = vsyncadd (%p2194_p9), [#allocation5], 4294967280 }
  0x19   : > { %262 = sfence }
  0x1a   : > { %s2441_s18 = sshll.u32 %s2077_s6, 2  ;;  %s2333_s24 = smov 20   ;;  %vm351_vm0 = vcmask 162816   ;;  %vm366_vm1 = vcmask 1041408   ;;  %v2087_v19 = vld [vmem:[%s2821_s3 + $0x8] sm:$0xff]  ;;  %vm362_vm2 = vcmask 31744  }
  0x1b   : > { %p290_p13 = scmp.lt.s32.totalorder %s2441_s18, 7  ;;  %s2334_s25 = smov 21   ;;  %v361_v25 = vpack.c.bf16 %v2087_v19, %v2087_v19  ;;  %vm504_vm3 = vcmask 154624   ;;  %v341_v35 = vld [vmem:[%s2821_s3] sm:$0xff]  ;;  %vm333_vm4 = vcmask 171008   ;;  %vm593_vm5 = vcmask 7168  }
  0x1c   : > { %s2335_s6 = smov 19   ;;  %s2336_s30 = smov 1   ;;  %v342_v39 = vpack.c.bf16 %v341_v35, %v341_v35  ;;  %v2096_v58 = vld [vmem:[%s2821_s3 + $0x10] sm:$0xff]  ;;  %vm756_vm6 = vcmask 1039360   ;;  %vm845_vm7 = vcmask 891904   ;;  %vm934_vm8 = vcmask 883712  }
  0x1d   : > { %s291_s19 = scalar_select %p290_p13, %s2441_s18, 7  ;;  %v514_v63 = vpack.c.bf16 %v2096_v58, %v2096_v58  ;;  %vm1023_vm9 = vcmask 875520   ;;  %vm1183_vm14 = vcmask 326656   ;;  %vm1198_vm15 = vcmask 1043456  }
  0x1e   : > { %s2337_s9 = smov 127   ;;  %s2338_s10 = smov 109  }
  0x1f   : > { %s2086_s20 = sshll.u32 %s291_s19, 2  ;;  %s2339_s14 = smov 108  }
  0x20   : > { %s293_s23 = scalar_lea.vmem %s2818_s0, %s2086_s20  ;;  %s2340_s15 = smov 107  }
  0x21   : > { %v298_v1 = vld [vmem:[%s293_s23 + $0x8] sm:$0xff]  ;;  %v297_v2 = vld [vmem:[%s293_s23] sm:$0xff]  ;;  %s1114_s22 = sld [smem:[#allocation3]]  ;;  %s2349_s16 = smov 86  }
  0x22   : > { %304 = vst [vmem:[#allocation1 + $0x10] ss:$2 sm:$0xff] %v298_v1  ;;  %s2175_s21 = sld [smem:[#allocation3 + $0x1]]  ;;  %s2284_s19 = scalar_lea.hbm %s2825_s7, 8 }
  0x23   : > { %302 = vst [vmem:[#allocation1] ss:$2 sm:$0xff] %v297_v2 }
  0x29   : > { %v307_v3 = vld.sshfl [vmem:[#allocation1 + $0x10] sm:$0xff pattern:$0x75316420]  ;;  %v308_v4 = vld.sshfl [vmem:[#allocation1 + $0x18] sm:$0xff pattern:$0x75316420] }
  0x2a   : > { %v314_v5 = vpack.c.bf16 %v308_v4, %v307_v3  ;;  %v305_v6 = vld.sshfl [vmem:[#allocation1] sm:$0xff pattern:$0x75316420]  ;;  %v306_v7 = vld.sshfl [vmem:[#allocation1 + $0x8] sm:$0xff pattern:$0x75316420] }
  0x2b   : > { %v313_v10 = vpack.c.bf16 %v306_v7, %v305_v6 }
  0x2c   : > { %v323_v8 = vunpack.c.l.b16 %v314_v5  ;;  %v316_v9 = vunpack.c.h.b16 %v314_v5 }
  0x2d   : > { %v322_v13 = vunpack.c.h.b16 %v313_v10  ;;  %v321_v14 = vunpack.c.l.b16 %v313_v10 }
  0x2e   : > { %v2448_v11 = vpack.c.b16 %v323_v8, %v323_v8  ;;  %v2450_v12 = vpack.c.b16 %v316_v9, %v316_v9 }
  0x2f   : > { %v2455_v15 = vpack.c.b16 %v322_v13, %v322_v13  ;;  %v2457_v16 = vpack.c.b16 %v321_v14, %v321_v14 }
  0x30   : > { %349 = vrot.lane.b32.xlu1 %v2448_v11, %s2333_s24  ;;  %343 = vrot.lane.b32.xlu0 %v2450_v12, %s2333_s24  ;;  %v690_v2 = vsel %vm366_vm1, %v2450_v12, 0  ;;  %v687_v10 = vsel %vm366_vm1, %v2448_v11, 0 }
  0x31   : > { %318 = vrot.lane.b32.xlu2 %v2450_v12, %s2334_s25  ;;  %v681_v8 = vsel %vm366_vm1, %v2457_v16, 0  ;;  %v684_v9 = vsel %vm366_vm1, %v2455_v15, 0 }
  0x38   : > { %347 = vrot.lane.b32.xlu0 %v2455_v15, %s2333_s24  ;;  %345 = vrot.lane.b32.xlu1 %v2457_v16, %s2333_s24 }
  0x39   : > { %329 = vrot.lane.b32.xlu2 %v2455_v15, %s2334_s25 }
  0x40   : > { %331 = vrot.lane.b32.xlu0 %v2448_v11, %s2334_s25  ;;  %327 = vrot.lane.b32.xlu1 %v2457_v16, %s2334_s25  ;;  %s2342_s25 = smov 40  }
  0x41   : > { %496 = vrot.lane.b32.xlu2 %v2450_v12, %s2335_s6 }
  0x48   : > { %502 = vrot.lane.b32.xlu1 %v2448_v11, %s2335_s6  ;;  %500 = vrot.lane.b32.xlu0 %v2455_v15, %s2335_s6 }
  0x49   : > { %498 = vrot.lane.b32.xlu2 %v2457_v16, %s2335_s6  ;;  %s2343_s6 = smov 42  }
  0x50   : > { %585 = vrot.lane.b32.xlu0 %v2450_v12, %s2336_s30  ;;  %589 = vrot.lane.b32.xlu1 %v2455_v15, %s2336_s30 }
  0x51   : > { %591 = vrot.lane.b32.xlu2 %v2448_v11, %s2336_s30 }
  0x58   : > { %587 = vrot.lane.b32.xlu0 %v2457_v16, %s2336_s30  ;;  %748 = vrot.lane.b32.xlu1 %v2457_v16, %s2337_s9  ;;  %s2344_s30 = smov 38  }
  0x59   : > { %752 = vrot.lane.b32.xlu2 %v2448_v11, %s2337_s9 }
  0x60   : > { %754 = vrot.lane.b32.xlu0 %v2450_v12, %s2337_s9  ;;  %750 = vrot.lane.b32.xlu1 %v2455_v15, %s2337_s9  ;;  %s2345_s9 = smov 2  }
  0x61   : > { %837 = vrot.lane.b32.xlu2 %v2457_v16, %s2338_s10 }
  0x68   : > { %843 = vrot.lane.b32.xlu1 %v2450_v12, %s2338_s10  ;;  %841 = vrot.lane.b32.xlu0 %v2448_v11, %s2338_s10 }
  0x69   : > { %839 = vrot.lane.b32.xlu2 %v2455_v15, %s2338_s10  ;;  %s2346_s10 = smov 126  }
  0x70   : > { %926 = vrot.lane.b32.xlu0 %v2457_v16, %s2339_s14  ;;  %930 = vrot.lane.b32.xlu1 %v2448_v11, %s2339_s14 }
  0x71   : > { %932 = vrot.lane.b32.xlu2 %v2450_v12, %s2339_s14 }
  0x78   : > { %928 = vrot.lane.b32.xlu0 %v2455_v15, %s2339_s14  ;;  %1015 = vrot.lane.b32.xlu1 %v2457_v16, %s2340_s15  ;;  %s2347_s14 = smov 90  }
  0x79   : > { %1019 = vrot.lane.b32.xlu2 %v2448_v11, %s2340_s15 }
  0x80   : > { %1021 = vrot.lane.b32.xlu0 %v2450_v12, %s2340_s15  ;;  %1017 = vrot.lane.b32.xlu1 %v2455_v15, %s2340_s15  ;;  %v2101_v12 = vld [vmem:[%s2821_s3 + $0x18] sm:$0xff]  ;;  %s2348_s15 = smov 88  }
  0x81   : > { %v603_v16 = vpack.c.bf16 %v2101_v12, %v2101_v12  ;;  %v2341_v12 = vmov 0  }
  0x82   : > { %2247 = vset.pattern.permute.xlu2 %v2341_v12  ;;  %2248 = vset.pattern.permute.xlu0 %v2341_v12 }
  0x8b   : > { %v319_v17 = vpop.permute.xlu2 %318 }
  0x93   : > { %v330_v18 = vpop.permute.xlu2 %329 }
  0x9b   : > { %v497_v20 = vpop.permute.xlu2 %496 }
  0xa2   : > { %v350_v21 = vpop.permute.xlu1 %349  ;;  %v344_v22 = vpop.permute.xlu0 %343 }
  0xa3   : > { %v354_v23 = vsel %vm351_vm0, %v350_v21, %v344_v22  ;;  %v499_v34 = vpop.permute.xlu2 %498 }
  0xa4   : > { %v376_v24 = vsel %vm366_vm1, %v354_v23, 0  ;;  %v511_v36 = vsel %vm504_vm3, %v497_v20, %v499_v34 }
  0xa5   : > { %424 = vmatpush.bf16.msra.mxu3 %v376_v24  ;;  %v518_v40 = vsel %vm366_vm1, %v511_v36, 0 }
  0xa8   : > { %2091 = vmatmul.msk.bf16.vlgmr.msra.gmra.mxu3 %vm362_vm2, %v361_v25 }
  0xaa   : > { %v348_v26 = vpop.permute.xlu0 %347  ;;  %v346_v27 = vpop.permute.xlu1 %345 }
  0xab   : > { %v358_v28 = vsel %vm351_vm0, %v344_v22, %v346_v27  ;;  %v352_v29 = vsel %vm351_vm0, %v346_v27, %v348_v26  ;;  %v353_v30 = vsel %vm351_vm0, %v348_v26, %v350_v21  ;;  %v592_v57 = vpop.permute.xlu2 %591  ;;  %vm1194_vm0 = vcmask 64512  }
  0xac   : > { %v367_v31 = vsel %vm366_vm1, %v358_v28, 0  ;;  %v370_v32 = vsel %vm366_vm1, %v352_v29, 0  ;;  %v373_v33 = vsel %vm366_vm1, %v353_v30, 0 }
  0xad   : > { %385 = vmatpush.bf16.msra.mxu0 %v367_v31  ;;  %398 = vmatpush.bf16.msra.mxu1 %v370_v32 }
  0xae   : > { %411 = vmatpush.bf16.msra.mxu2 %v373_v33 }
  0xb0   : > { %2088 = vmatmul.msk.bf16.vlgmr.msra.gmra.mxu0 %vm362_vm2, %v361_v25  ;;  %2089 = vmatmul.msk.bf16.vlgmr.msra.gmra.mxu1 %vm362_vm2, %v361_v25 }
  0xb1   : > { %2090 = vmatmul.msk.bf16.vlgmr.msra.gmra.mxu2 %vm362_vm2, %v361_v25  ;;  %v2106_v25 = vld [vmem:[%s2821_s3 + $0x20] sm:$0xff] }
  0xb2   : > { %v332_v37 = vpop.permute.xlu0 %331  ;;  %v328_v38 = vpop.permute.xlu1 %327  ;;  %v676_v29 = vpack.c.bf16 %v2106_v25, %v2106_v25 }
  0xb3   : > { %v340_v41 = vsel %vm333_vm4, %v319_v17, %v328_v38  ;;  %v336_v42 = vsel %vm333_vm4, %v332_v37, %v319_v17  ;;  %v334_v43 = vsel %vm333_vm4, %v328_v38, %v330_v18  ;;  %v335_v44 = vsel %vm333_vm4, %v330_v18, %v332_v37  ;;  %v753_v17 = vpop.permute.xlu2 %752 }
  0xb4   : > { %v433_v45 = vsel %vm366_vm1, %v340_v41, 0  ;;  %v442_v46 = vsel %vm366_vm1, %v336_v42, 0  ;;  %v436_v47 = vsel %vm366_vm1, %v334_v43, 0  ;;  %v439_v48 = vsel %vm366_vm1, %v335_v44, 0 }
  0xb5   : > { %451 = vmatpush.bf16.msrb.mxu0 %v433_v45  ;;  %490 = vmatpush.bf16.msrb.mxu3 %v442_v46  ;;  %vm1425_vm4 = vcmask 15360  }
  0xb6   : > { %464 = vmatpush.bf16.msrb.mxu1 %v436_v47  ;;  %477 = vmatpush.bf16.msrb.mxu2 %v439_v48 }
  0xb8   : > { %2095 = vmatmul.msk.bf16.vlgmr.msrb.gmra.mxu3 %vm362_vm2, %v342_v39 }
  0xb9   : > { %536 = vmatpush.bf16.msra.mxu0 %v518_v40 }
  0xba   : > { %v503_v49 = vpop.permute.xlu1 %502  ;;  %v501_v50 = vpop.permute.xlu0 %500 }
  0xbb   : > { %v507_v51 = vsel %vm504_vm3, %v503_v49, %v497_v20  ;;  %v506_v52 = vsel %vm504_vm3, %v501_v50, %v503_v49  ;;  %v505_v53 = vsel %vm504_vm3, %v499_v34, %v501_v50  ;;  %v838_v26 = vpop.permute.xlu2 %837  ;;  %vm1165_vm3 = vcmask 343040  }
  0xbc   : > { %v527_v54 = vsel %vm366_vm1, %v507_v51, 0  ;;  %v524_v55 = vsel %vm366_vm1, %v506_v52, 0  ;;  %v521_v56 = vsel %vm366_vm1, %v505_v53, 0  ;;  %v2116_v53 = vld [vmem:[%s2821_s3 + $0x30] sm:$0xff] }
  0xbd   : > { %575 = vmatpush.bf16.msra.mxu3 %v527_v54  ;;  %549 = vmatpush.bf16.msra.mxu1 %v521_v56 }
  0xbe   : > { %562 = vmatpush.bf16.msra.mxu2 %v524_v55 }
  0xc0   : > { %2092 = vmatmul.msk.bf16.vlgmr.msrb.gmra.mxu0 %vm362_vm2, %v342_v39  ;;  %2093 = vmatmul.msk.bf16.vlgmr.msrb.gmra.mxu1 %vm362_vm2, %v342_v39 }
  0xc1   : > { %2094 = vmatmul.msk.bf16.vlgmr.msrb.gmra.mxu2 %vm362_vm2, %v342_v39  ;;  %v2111_v39 = vld [vmem:[%s2821_s3 + $0x28] sm:$0xff] }
  0xc2   : > { %v586_v59 = vpop.permute.xlu0 %585  ;;  %v590_v60 = vpop.permute.xlu1 %589  ;;  %v766_v43 = vpack.c.bf16 %v2111_v39, %v2111_v39 }
  0xc3   : > { %v596_v61 = vsel %vm593_vm5, %v592_v57, %v586_v59  ;;  %v595_v62 = vsel %vm593_vm5, %v590_v60, %v592_v57  ;;  %v840_v32 = vpop.permute.xlu2 %839  ;;  %v855_v57 = vpack.c.bf16 %v2116_v53, %v2116_v53 }
  0xc4   : > { %v616_v0 = vsel %vm366_vm1, %v596_v61, 0  ;;  %v613_v1 = vsel %vm366_vm1, %v595_v62, 0  ;;  %v846_v33 = vsel %vm845_vm7, %v838_v26, %v840_v32 }
  0xc5   : > { %664 = vmatpush.bf16.msrb.mxu3 %v616_v0  ;;  %651 = vmatpush.bf16.msrb.mxu2 %v613_v1  ;;  %v860_v36 = vsel %vm366_vm1, %v846_v33, 0 }
  0xc8   : > { %2100 = vmatmul.msk.bf16.vlgmr.msra.gmra.mxu3 %vm362_vm2, %v514_v63 }
  0xc9   : > { %738 = vmatpush.bf16.msra.mxu3 %v690_v2 }
  0xca   : > { %v588_v3 = vpop.permute.xlu0 %587  ;;  %v749_v13 = vpop.permute.xlu1 %748 }
  0xcb   : > { %v600_v4 = vsel %vm593_vm5, %v586_v59, %v588_v3  ;;  %v594_v5 = vsel %vm593_vm5, %v588_v3, %v590_v60  ;;  %v933_v41 = vpop.permute.xlu2 %932  ;;  %v2121_v3 = vld [vmem:[%s2821_s3 + $0x38] sm:$0xff]  ;;  %vm1588_vm5 = vcmask 1031168  }
  0xcc   : > { %v607_v6 = vsel %vm366_vm1, %v600_v4, 0  ;;  %v610_v7 = vsel %vm366_vm1, %v594_v5, 0  ;;  %v944_v4 = vpack.c.bf16 %v2121_v3, %v2121_v3  ;;  %v2126_v5 = vld [vmem:[%s2821_s3 + $0x40] sm:$0xff] }
  0xcd   : > { %625 = vmatpush.bf16.msrb.mxu0 %v607_v6  ;;  %638 = vmatpush.bf16.msrb.mxu1 %v610_v7  ;;  %v1033_v6 = vpack.c.bf16 %v2126_v5, %v2126_v5 }
  0xd0   : > { %2097 = vmatmul.msk.bf16.vlgmr.msra.gmra.mxu0 %vm362_vm2, %v514_v63  ;;  %2098 = vmatmul.msk.bf16.vlgmr.msra.gmra.mxu1 %vm362_vm2, %v514_v63 }
  0xd1   : > { %2099 = vmatmul.msk.bf16.vlgmr.msra.gmra.mxu2 %vm362_vm2, %v514_v63  ;;  %699 = vmatpush.bf16.msra.mxu0 %v681_v8 }
  0xd2   : > { %712 = vmatpush.bf16.msra.mxu1 %v684_v9  ;;  %725 = vmatpush.bf16.msra.mxu2 %v687_v10  ;;  %v755_v14 = vpop.permute.xlu0 %754  ;;  %v751_v18 = vpop.permute.xlu1 %750  ;;  %v1104_v10 = vld [vmem:[%s2822_s4] sm:$0xff] }
  0xd3   : > { %v763_v15 = vsel %vm756_vm6, %v755_v14, %v749_v13  ;;  %v757_v19 = vsel %vm756_vm6, %v749_v13, %v751_v18  ;;  %v759_v20 = vsel %vm756_vm6, %v753_v17, %v755_v14  ;;  %v758_v21 = vsel %vm756_vm6, %v751_v18, %v753_v17  ;;  %v1020_v59 = vpop.permute.xlu2 %1019  ;;  %1107 = vperm.xlu2 %2247, %v1104_v10  }
  0xd4   : > { %v779_v11 = vsel %vm366_vm1, %v763_v15, 0  ;;  %v771_v22 = vsel %vm366_vm1, %v757_v19, 0  ;;  %v777_v23 = vsel %vm366_vm1, %v759_v20, 0  ;;  %v774_v24 = vsel %vm366_vm1, %v758_v21, 0 }
  0xd5   : > { %vm1677_vm6 = vcmask 736256  }
  0xd8   : > { %2105 = vmatmul.msk.bf16.vlgmr.msrb.gmra.mxu3 %vm362_vm2, %v603_v16 }
  0xd9   : > { %827 = vmatpush.bf16.msrb.mxu3 %v779_v11 }
  0xda   : > { %v844_v27 = vpop.permute.xlu1 %843  ;;  %v842_v31 = vpop.permute.xlu0 %841 }
  0xdb   : > { %v852_v28 = vsel %vm845_vm7, %v844_v27, %v838_v26  ;;  %v848_v34 = vsel %vm845_vm7, %v842_v31, %v844_v27  ;;  %v847_v35 = vsel %vm845_vm7, %v840_v32, %v842_v31  ;;  %vm1766_vm7 = vcmask 719872  }
  0xdc   : > { %v868_v30 = vsel %vm366_vm1, %v852_v28, 0  ;;  %v866_v37 = vsel %vm366_vm1, %v848_v34, 0  ;;  %v863_v38 = vsel %vm366_vm1, %v847_v35, 0 }
  0xe0   : > { %2102 = vmatmul.msk.bf16.vlgmr.msrb.gmra.mxu0 %vm362_vm2, %v603_v16  ;;  %2103 = vmatmul.msk.bf16.vlgmr.msrb.gmra.mxu1 %vm362_vm2, %v603_v16 }
  0xe1   : > { %2104 = vmatmul.msk.bf16.vlgmr.msrb.gmra.mxu2 %vm362_vm2, %v603_v16  ;;  %788 = vmatpush.bf16.msrb.mxu0 %v771_v22 }
  0xe2   : > { %801 = vmatpush.bf16.msrb.mxu1 %v774_v24  ;;  %814 = vmatpush.bf16.msrb.mxu2 %v777_v23  ;;  %v927_v40 = vpop.permute.xlu0 %926  ;;  %v931_v45 = vpop.permute.xlu1 %930 }
  0xe3   : > { %v941_v42 = vsel %vm934_vm8, %v933_v41, %v927_v40  ;;  %v937_v49 = vsel %vm934_vm8, %v931_v45, %v933_v41 }
  0xe4   : > { %v957_v44 = vsel %vm366_vm1, %v941_v42, 0  ;;  %v955_v52 = vsel %vm366_vm1, %v937_v49, 0 }
  0xe8   : > { %2110 = vmatmul.msk.bf16.vlgmr.msra.gmra.mxu3 %vm362_vm2, %v676_v29 }
  0xe9   : > { %916 = vmatpush.bf16.msra.mxu3 %v868_v30 }
  0xea   : > { %v929_v46 = vpop.permute.xlu0 %928  ;;  %v1016_v55 = vpop.permute.xlu1 %1015 }
  0xeb   : > { %v935_v47 = vsel %vm934_vm8, %v927_v40, %v929_v46  ;;  %v936_v48 = vsel %vm934_vm8, %v929_v46, %v931_v45  ;;  %vm1855_vm8 = vcmask 703488  }
  0xec   : > { %v949_v50 = vsel %vm366_vm1, %v935_v47, 0  ;;  %v952_v51 = vsel %vm366_vm1, %v936_v48, 0 }
  0xf0   : > { %2107 = vmatmul.msk.bf16.vlgmr.msra.gmra.mxu0 %vm362_vm2, %v676_v29  ;;  %2108 = vmatmul.msk.bf16.vlgmr.msra.gmra.mxu1 %vm362_vm2, %v676_v29 }
  0xf1   : > { %2109 = vmatmul.msk.bf16.vlgmr.msra.gmra.mxu2 %vm362_vm2, %v676_v29  ;;  %877 = vmatpush.bf16.msra.mxu0 %v860_v36 }
  0xf2   : > { %890 = vmatpush.bf16.msra.mxu1 %v863_v38  ;;  %903 = vmatpush.bf16.msra.mxu2 %v866_v37  ;;  %v1022_v54 = vpop.permute.xlu0 %1021  ;;  %v1018_v60 = vpop.permute.xlu1 %1017 }
  0xf3   : > { %v1030_v56 = vsel %vm1023_vm9, %v1022_v54, %v1016_v55  ;;  %v1024_v61 = vsel %vm1023_vm9, %v1016_v55, %v1018_v60  ;;  %v1026_v62 = vsel %vm1023_vm9, %v1020_v59, %v1022_v54  ;;  %v1025_v63 = vsel %vm1023_vm9, %v1018_v60, %v1020_v59 }
  0xf4   : > { %v1046_v58 = vsel %vm366_vm1, %v1030_v56, 0  ;;  %v1038_v0 = vsel %vm366_vm1, %v1024_v61, 0  ;;  %v1044_v1 = vsel %vm366_vm1, %v1026_v62, 0  ;;  %v1041_v2 = vsel %vm366_vm1, %v1025_v63, 0 }
  0xf8   : > { %2115 = vmatmul.msk.bf16.vlgmr.msrb.gmra.mxu3 %vm362_vm2, %v766_v43 }
  0xf9   : > { %1005 = vmatpush.bf16.msrb.mxu3 %v957_v44 }
 0x100   : > { %2112 = vmatmul.msk.bf16.vlgmr.msrb.gmra.mxu0 %vm362_vm2, %v766_v43  ;;  %2113 = vmatmul.msk.bf16.vlgmr.msrb.gmra.mxu1 %vm362_vm2, %v766_v43 }
 0x101   : > { %2114 = vmatmul.msk.bf16.vlgmr.msrb.gmra.mxu2 %vm362_vm2, %v766_v43  ;;  %966 = vmatpush.bf16.msrb.mxu0 %v949_v50 }
 0x102   : > { %979 = vmatpush.bf16.msrb.mxu1 %v952_v51  ;;  %992 = vmatpush.bf16.msrb.mxu2 %v955_v52 }
 0x108   : > { %2120 = vmatmul.msk.bf16.vlgmr.msra.gmra.mxu3 %vm362_vm2, %v855_v57 }
 0x109   : > { %1094 = vmatpush.bf16.msra.mxu3 %v1046_v58 }
 0x110   : > { %2117 = vmatmul.msk.bf16.vlgmr.msra.gmra.mxu0 %vm362_vm2, %v855_v57  ;;  %2118 = vmatmul.msk.bf16.vlgmr.msra.gmra.mxu1 %vm362_vm2, %v855_v57 }
 0x111   : > { %2119 = vmatmul.msk.bf16.vlgmr.msra.gmra.mxu2 %vm362_vm2, %v855_v57  ;;  %1055 = vmatpush.bf16.msra.mxu0 %v1038_v0 }
 0x112   : > { %1068 = vmatpush.bf16.msra.mxu1 %v1041_v2  ;;  %1081 = vmatpush.bf16.msra.mxu2 %v1044_v1 }
 0x118   : > { %2125 = vmatmul.msk.bf16.vlgmr.msrb.gmra.mxu3 %vm362_vm2, %v944_v4 }
 0x120   : > { %2122 = vmatmul.msk.bf16.vlgmr.msrb.gmra.mxu0 %vm362_vm2, %v944_v4  ;;  %2123 = vmatmul.msk.bf16.vlgmr.msrb.gmra.mxu1 %vm362_vm2, %v944_v4 }
 0x121   : > { %2124 = vmatmul.msk.bf16.vlgmr.msrb.gmra.mxu2 %vm362_vm2, %v944_v4 }
 0x128   : > { %2130 = vmatmul.msk.bf16.vlgmr.msra.gmra.mxu3 %vm362_vm2, %v1033_v6 }
 0x12b   : > { %v426_v7 = vpop.f32.mrf.mxu3 }
 0x12d   : > { %v387_v8 = vpop.f32.mrf.mxu0  ;;  %v400_v9 = vpop.f32.mrf.mxu1 }
 0x130   : > { %2127 = vmatmul.msk.bf16.vlgmr.msra.gmra.mxu0 %vm362_vm2, %v1033_v6  ;;  %2128 = vmatmul.msk.bf16.vlgmr.msra.gmra.mxu1 %vm362_vm2, %v1033_v6 }
 0x131   : > { %2129 = vmatmul.msk.bf16.vlgmr.msra.gmra.mxu2 %vm362_vm2, %v1033_v6  ;;  %vm1336_vm2 = vcmask 310272  }
 0x133   : > { %v428_v13 = vpop.f32.mrf.mxu3 }
 0x134   : > { %v413_v14 = vpop.f32.mrf.mxu2 }
 0x135   : > { %v389_v15 = vpop.f32.mrf.mxu0  ;;  %v402_v16 = vpop.f32.mrf.mxu1 }
 0x13b   : > { %v492_v11 = vpop.f32.mrf.mxu3 }
 0x13c   : > { %v415_v17 = vpop.f32.mrf.mxu2  ;;  %v493_v18 = vadd.f32 %v492_v11, %v426_v7 }
 0x13d   : > { %v453_v19 = vpop.f32.mrf.mxu0  ;;  %v466_v20 = vpop.f32.mrf.mxu1 }
 0x13e   : > { %v454_v21 = vadd.f32 %v453_v19, %v387_v8  ;;  %v467_v22 = vadd.f32 %v466_v20, %v400_v9 }
 0x143   : > { %v494_v23 = vpop.f32.mrf.mxu3 }
 0x144   : > { %v479_v24 = vpop.f32.mrf.mxu2 }
 0x145   : > { %v480_v25 = vadd.f32 %v479_v24, %v413_v14  ;;  %v455_v26 = vpop.f32.mrf.mxu0  ;;  %v468_v27 = vpop.f32.mrf.mxu1 }
 0x14b   : > { %v577_v28 = vpop.f32.mrf.mxu3 }
 0x14c   : > { %v481_v29 = vpop.f32.mrf.mxu2  ;;  %v584_v30 = vadd.f32 %v577_v28, %v493_v18 }
 0x14d   : > { %v538_v31 = vpop.f32.mrf.mxu0  ;;  %v551_v32 = vpop.f32.mrf.mxu1 }
 0x14e   : > { %v581_v33 = vadd.f32 %v538_v31, %v454_v21  ;;  %v582_v34 = vadd.f32 %v551_v32, %v467_v22 }
 0x153   : > { %v579_v35 = vpop.f32.mrf.mxu3 }
 0x154   : > { %v564_v36 = vpop.f32.mrf.mxu2 }
 0x155   : > { %v583_v37 = vadd.f32 %v564_v36, %v480_v25  ;;  %v540_v38 = vpop.f32.mrf.mxu0  ;;  %v553_v39 = vpop.f32.mrf.mxu1 }
 0x15b   : > { %v666_v40 = vpop.f32.mrf.mxu3 }
 0x15c   : > { %v566_v41 = vpop.f32.mrf.mxu2  ;;  %v673_v42 = vadd.f32 %v666_v40, %v584_v30  ;;  %v1108_v40 = vpop.permute.xlu2 %1107 }
 0x15d   : > { %v627_v43 = vpop.f32.mrf.mxu0  ;;  %v640_v44 = vpop.f32.mrf.mxu1 }
 0x15e   : > { %v670_v45 = vadd.f32 %v627_v43, %v581_v33  ;;  %v671_v46 = vadd.f32 %v640_v44, %v582_v34  ;;  %v2609_v34 = vld [vmem:[%s2819_s1] sm:$0xff] }
 0x15f   : > { %v1129_v38 = vperm.slane %v2609_v34, 0  ;;  %v1130_v43 = vperm.slane %v2609_v34, 2 }
 0x163   : > { %v668_v47 = vpop.f32.mrf.mxu3 }
 0x164   : > { %v653_v48 = vpop.f32.mrf.mxu2 }
 0x165   : > { %v672_v49 = vadd.f32 %v653_v48, %v583_v37  ;;  %v629_v50 = vpop.f32.mrf.mxu0  ;;  %v642_v51 = vpop.f32.mrf.mxu1  ;;  %v1119_v48 = vstv %s1114_s22  ;;  %s286_s22 = sand.u32 1, %s2322_s27  }
 0x166   : > { %v1137_v51 = vperm.slane %v1129_v38, 0  ;;  %s2780_s23 = sshll.u32 %s286_s22, 2 }
 0x16b   : > { %v740_v52 = vpop.f32.mrf.mxu3 }
 0x16c   : > { %v655_v53 = vpop.f32.mrf.mxu2  ;;  %v747_v54 = vadd.f32 %v740_v52, %v673_v42 }
 0x16d   : > { %v701_v55 = vpop.f32.mrf.mxu0  ;;  %v714_v56 = vpop.f32.mrf.mxu1 }
 0x16e   : > { %v744_v21 = vadd.f32 %v701_v55, %v670_v45  ;;  %v745_v22 = vadd.f32 %v714_v56, %v671_v46  ;;  %v1132_v56 = vperm.slane %v2609_v34, 6 }
 0x173   : > { %v742_v57 = vpop.f32.mrf.mxu3 }
 0x174   : > { %v727_v58 = vpop.f32.mrf.mxu2 }
 0x175   : > { %v703_v59 = vpop.f32.mrf.mxu0  ;;  %v716_v60 = vpop.f32.mrf.mxu1  ;;  %v746_v35 = vadd.f32 %v727_v58, %v672_v49  ;;  %v1138_v49 = vperm.slane %v1130_v43, 0 }
 0x176   : > { %v1131_v59 = vperm.slane %v2609_v34, 4 }
 0x17b   : > { %v829_v61 = vpop.f32.mrf.mxu3 }
 0x17c   : > { %v729_v62 = vpop.f32.mrf.mxu2  ;;  %v836_v23 = vadd.f32 %v829_v61, %v747_v54 }
 0x17d   : > { %v790_v63 = vpop.f32.mrf.mxu0  ;;  %v803_v0 = vpop.f32.mrf.mxu1 }
 0x17e   : > { %v833_v24 = vadd.f32 %v790_v63, %v744_v21  ;;  %v834_v25 = vadd.f32 %v803_v0, %v745_v22  ;;  %v1936_v22 = vld [vmem:[#allocation2] sm:$0x1] }
 0x183   : > { %v831_v1 = vpop.f32.mrf.mxu3 }
 0x184   : > { %v816_v2 = vpop.f32.mrf.mxu2 }
 0x185   : > { %v792_v3 = vpop.f32.mrf.mxu0  ;;  %v805_v4 = vpop.f32.mrf.mxu1  ;;  %v835_v44 = vadd.f32 %v816_v2, %v746_v35 }
 0x186   : > { %v1140_v4 = vperm.slane %v1132_v56, 0 }
 0x18b   : > { %v918_v5 = vpop.f32.mrf.mxu3 }
 0x18c   : > { %v818_v6 = vpop.f32.mrf.mxu2  ;;  %v925_v26 = vadd.f32 %v918_v5, %v836_v23 }
 0x18d   : > { %v879_v7 = vpop.f32.mrf.mxu0  ;;  %v892_v8 = vpop.f32.mrf.mxu1  ;;  %v1139_v6 = vperm.slane %v1131_v59, 0 }
 0x18e   : > { %v922_v27 = vadd.f32 %v879_v7, %v833_v24  ;;  %v923_v28 = vadd.f32 %v892_v8, %v834_v25  ;;  %v2131_v25 = vld [vmem:[%s2823_s5 + $0x1] sm:$0x1] }
 0x193   : > { %v920_v9 = vpop.f32.mrf.mxu3 }
 0x194   : > { %v905_v10 = vpop.f32.mrf.mxu2 }
 0x195   : > { %v881_v12 = vpop.f32.mrf.mxu0  ;;  %v894_v13 = vpop.f32.mrf.mxu1  ;;  %v924_v47 = vadd.f32 %v905_v10, %v835_v44 }
 0x19b   : > { %v1007_v14 = vpop.f32.mrf.mxu3 }
 0x19c   : > { %v907_v15 = vpop.f32.mrf.mxu2  ;;  %v1014_v29 = vadd.f32 %v1007_v14, %v925_v26 }
 0x19d   : > { %v968_v16 = vpop.f32.mrf.mxu0  ;;  %v981_v11 = vpop.f32.mrf.mxu1 }
 0x19e   : > { %v1011_v31 = vadd.f32 %v968_v16, %v922_v27  ;;  %v1012_v32 = vadd.f32 %v981_v11, %v923_v28 }
 0x1a3   : > { %v1009_v17 = vpop.f32.mrf.mxu3 }
 0x1a4   : > { %v994_v18 = vpop.f32.mrf.mxu2 }
 0x1a5   : > { %v970_v19 = vpop.f32.mrf.mxu0  ;;  %v983_v20 = vpop.f32.mrf.mxu1  ;;  %v1013_v53 = vadd.f32 %v994_v18, %v924_v47 }
 0x1ab   : > { %v1096_v30 = vpop.f32.mrf.mxu3 }
 0x1ac   : > { %v996_v33 = vpop.f32.mrf.mxu2  ;;  %v1103_v36 = vadd.f32 %v1096_v30, %v1014_v29  ;;  %v1193_v29 = vpack.c.bf16 %v2131_v25, %v2131_v25 }
 0x1ad   : > { %v1057_v37 = vpop.f32.mrf.mxu0  ;;  %v1070_v39 = vpop.f32.mrf.mxu1 }
 0x1ae   : > { %v1100_v41 = vadd.f32 %v1057_v37, %v1011_v31  ;;  %v1101_v42 = vadd.f32 %v1070_v39, %v1012_v32  ;;  %v1113_v50 = vadd.f32 %v1108_v40, %v1103_v36 }
 0x1b0   : > { %v1110_v45 = vadd.f32 %v1108_v40, %v1100_v41  ;;  %v1111_v46 = vadd.f32 %v1108_v40, %v1101_v42  ;;  %v1123_v60 = vmul.f32 %v1119_v48, %v1113_v50  ;;  %vm1118_vm12 = vcmp.ge.f32.partialorder %v1113_v50, 0.0 }
 0x1b2   : > { %vm1115_vm10 = vcmp.ge.f32.partialorder %v1110_v45, 0.0  ;;  %v1120_v52 = vmul.f32 %v1119_v48, %v1110_v45  ;;  %vm1116_vm11 = vcmp.ge.f32.partialorder %v1111_v46, 0.0  ;;  %v1121_v54 = vmul.f32 %v1119_v48, %v1111_v46 }
 0x1b3   : > { %v1098_v55 = vpop.f32.mrf.mxu3  ;;  %v1127_v7 = vsel %vm1118_vm12, %v1113_v50, %v1123_v60  ;;  %v1173_v50 = vld [vmem:[%s2823_s5] sm:$0x1] }
 0x1b4   : > { %v1124_v57 = vsel %vm1115_vm10, %v1110_v45, %v1120_v52  ;;  %v1083_v58 = vpop.f32.mrf.mxu2  ;;  %v1125_v62 = vsel %vm1116_vm11, %v1111_v46, %v1121_v54  ;;  %v1144_v12 = vmul.f32 %v1140_v4, %v1127_v7  ;;  %v1174_v56 = vpack.c.bf16 %v1173_v50, %v1173_v50  ;;  %v2140_v4 = vld [vmem:[%s2823_s5 + $0x2] sm:$0x1] }
 0x1b5   : > { %v1141_v61 = vmul.f32 %v1137_v51, %v1124_v57  ;;  %v1102_v63 = vadd.f32 %v1083_v58, %v1013_v53  ;;  %v1059_v0 = vpop.f32.mrf.mxu0  ;;  %v1072_v1 = vpop.f32.mrf.mxu1  ;;  %v1142_v2 = vmul.f32 %v1138_v49, %v1125_v62 }
 0x1b7   : > { %v1112_v3 = vadd.f32 %v1108_v40, %v1102_v63  ;;  %v1145_v5 = vpack.c.bf16 %v1142_v2, %v1141_v61 }
 0x1b9   : > { %vm1117_vm13 = vcmp.ge.f32.partialorder %v1112_v3, 0.0  ;;  %v1122_v8 = vmul.f32 %v1119_v48, %v1112_v3  ;;  %v1154_v9 = vunpack.c.h.b16 %v1145_v5  ;;  %v1153_v20 = vunpack.c.l.b16 %v1145_v5 }
 0x1bb   : > { %v1126_v10 = vsel %vm1117_vm13, %v1112_v3, %v1122_v8  ;;  %v2615_v13 = vpack.c.b16 %v1154_v9, %v1154_v9  ;;  %v2625_v21 = vpack.c.b16 %v1153_v20, %v1153_v20  ;;  %v1346_v8 = vpack.c.bf16 %v2140_v4, %v2140_v4  ;;  %v2145_v20 = vld [vmem:[%s2823_s5 + $0x3] sm:$0x1] }
 0x1bc   : > { %v1143_v14 = vmul.f32 %v1139_v6, %v1126_v10  ;;  %v1085_v15 = vpop.f32.mrf.mxu2  ;;  %vm1982_vm13 = vcmask 1042434  }
 0x1bd   : > { %1179 = vrot.lane.b32.xlu1 %v2615_v13, %s2342_s25 }
 0x1be   : > { %v1146_v16 = vpack.c.bf16 %v1144_v12, %v1143_v14 }
 0x1c0   : > { %v1148_v11 = vunpack.c.h.b16 %v1146_v16  ;;  %v1155_v17 = vunpack.c.l.b16 %v1146_v16 }
 0x1c2   : > { %v2618_v18 = vpack.c.b16 %v1148_v11, %v1148_v11  ;;  %v2620_v19 = vpack.c.b16 %v1155_v17, %v1155_v17 }
 0x1c4   : > { %1181 = vrot.lane.b32.xlu2 %v2620_v19, %s2342_s25  ;;  %1175 = vrot.lane.b32.xlu0 %v2618_v18, %s2342_s25  ;;  %v1519_v9 = vsel %vm1198_vm15, %v2620_v19, 0  ;;  %v1522_v10 = vsel %vm1198_vm15, %v2618_v18, 0 }
 0x1c5   : > { %1150 = vrot.lane.b32.xlu1 %v2618_v18, %s2343_s6 }
 0x1cc   : > { %1161 = vrot.lane.b32.xlu2 %v2615_v13, %s2343_s6  ;;  %1177 = vrot.lane.b32.xlu0 %v2625_v21, %s2342_s25 }
 0x1cd   : > { %1159 = vrot.lane.b32.xlu1 %v2625_v21, %s2343_s6 }
 0x1d4   : > { %1328 = vrot.lane.b32.xlu2 %v2618_v18, %s2344_s30  ;;  %1163 = vrot.lane.b32.xlu0 %v2620_v19, %s2343_s6  ;;  %s2002_s6 = scalar_lea.hbm %s2825_s7, %s2441_s18  ;;  %s1992_s18 = scalar_lea.sflag [#allocation4], %s286_s22 }
 0x1d5   : > { %1334 = vrot.lane.b32.xlu1 %v2620_v19, %s2344_s30 }
 0x1dc   : > { %1330 = vrot.lane.b32.xlu2 %v2625_v21, %s2344_s30  ;;  %1332 = vrot.lane.b32.xlu0 %v2615_v13, %s2344_s30  ;;  %s288_s30 = scalar_lea.vmem [#allocation6], %s2780_s23 }
 0x1dd   : > { %1421 = vrot.lane.b32.xlu1 %v2615_v13, %s2345_s9 }
 0x1e4   : > { %1423 = vrot.lane.b32.xlu2 %v2620_v19, %s2345_s9  ;;  %1417 = vrot.lane.b32.xlu0 %v2618_v18, %s2345_s9 }
 0x1e5   : > { %1580 = vrot.lane.b32.xlu1 %v2625_v21, %s2346_s10 }
 0x1ec   : > { %1584 = vrot.lane.b32.xlu2 %v2620_v19, %s2346_s10  ;;  %1419 = vrot.lane.b32.xlu0 %v2625_v21, %s2345_s9  ;;  %s2004_s9 = sshll.u32 %s288_s30, 4  ;;  %s2005_s9 = int_to_ptr.vmem [resolvable:$true] %s2004_s9 }
 0x1ed   : > { %1582 = vrot.lane.b32.xlu1 %v2615_v13, %s2346_s10 }
 0x1f4   : > { %1669 = vrot.lane.b32.xlu2 %v2625_v21, %s2347_s14  ;;  %1586 = vrot.lane.b32.xlu0 %v2618_v18, %s2346_s10  ;;  %s2006_s10 = sshll.u32 %s2002_s6, 4  ;;  %s2007_s10 = int_to_ptr.hbm [resolvable:$true] %s2006_s10 }
 0x1f5   : > { %1675 = vrot.lane.b32.xlu1 %v2618_v18, %s2347_s14 }
 0x1fc   : > { %1671 = vrot.lane.b32.xlu2 %v2615_v13, %s2347_s14  ;;  %1673 = vrot.lane.b32.xlu0 %v2620_v19, %s2347_s14  ;;  %s2278_s14 = sshra.s32 %s2007_s10, 4  ;;  %s2279_s14 = int_to_ptr.hbm [resolvable:$true] %s2278_s14 }
 0x1fd   : > { %1762 = vrot.lane.b32.xlu1 %v2620_v19, %s2348_s15  ;;  %p2285_p3 = scmp.lt.s32.totalorder %s2279_s14, %s2825_s7 }
 0x204   : > { %1764 = vrot.lane.b32.xlu2 %v2618_v18, %s2348_s15  ;;  %1758 = vrot.lane.b32.xlu0 %v2625_v21, %s2348_s15 }
 0x205   : > { %1847 = vrot.lane.b32.xlu1 %v2625_v21, %s2349_s16 }
 0x20c   : > { %1851 = vrot.lane.b32.xlu2 %v2620_v19, %s2349_s16  ;;  %1760 = vrot.lane.b32.xlu0 %v2615_v13, %s2348_s15  ;;  %v1516_v19 = vsel %vm1198_vm15, %v2615_v13, 0  ;;  %s2280_s15 = scalar_lea.hbm %s2279_s14, 4 }
 0x20d   : > { %1849 = vrot.lane.b32.xlu1 %v2615_v13, %s2349_s16  ;;  %p2281_p0 = scmp.ne.s32.totalorder %s2279_s14, %s2280_s15  ;;  %p2286_p4 = scmp.lt.s32.totalorder %s2284_s19, %s2280_s15 }
 0x20f   : > { %p2282_p1 = pnand %p2281_p0, %p2428_p5  ;;  %p2287_p7 = por %p2286_p4, %p2285_p3 }
 0x211   : > { %p2283_p2 = pneg %p2282_p1 }
 0x213   : > { %p2288_p8 = pnand %p2287_p7, %p2283_p2 }
 0x214   : > { %1939 = vperm.xlu2 %2247, %v1936_v22   ;;  %1853 = vrot.lane.b32.xlu0 %v2618_v18, %s2349_s16  ;;  %v1513_v18 = vsel %vm1198_vm15, %v2625_v21, 0 }
 0x21e   : > { %v1182_v23 = vpop.permute.xlu2 %1181 }
 0x226   : > { %v1162_v24 = vpop.permute.xlu2 %1161 }
 0x22e   : > { %v1329_v30 = vpop.permute.xlu2 %1328 }
 0x22f   : > { %v1180_v26 = vpop.permute.xlu1 %1179 }
 0x230   : > { %v1185_v27 = vsel %vm1183_vm14, %v1180_v26, %v1182_v23 }
 0x231   : > { %v1205_v28 = vsel %vm1198_vm15, %v1185_v27, 0 }
 0x232   : > { %1243 = vmatpush.bf16.msrb.mxu2 %v1205_v28 }
 0x235   : > { %2134 = vmatmul.msk.bf16.vlgmr.msrb.gmra.mxu2 %vm1194_vm0, %v1193_v29 }
 0x236   : > { %v1176_v31 = vpop.permute.xlu0 %1175  ;;  %v1331_v36 = vpop.permute.xlu2 %1330 }
 0x237   : > { %v1186_v32 = vsel %vm1183_vm14, %v1182_v23, %v1176_v31  ;;  %v1151_v35 = vpop.permute.xlu1 %1150  ;;  %v1343_v43 = vsel %vm1336_vm2, %v1329_v30, %v1331_v36 }
 0x238   : > { %v1208_v33 = vsel %vm1198_vm15, %v1186_v32, 0  ;;  %v1350_v48 = vsel %vm1198_vm15, %v1343_v43, 0 }
 0x239   : > { %1256 = vmatpush.bf16.msrb.mxu3 %v1208_v33  ;;  %v2150_v33 = vld [vmem:[%s2823_s5 + $0x4] sm:$0x1] }
 0x23c   : > { %2135 = vmatmul.msk.bf16.vlgmr.msrb.gmra.mxu3 %vm1194_vm0, %v1193_v29 }
 0x23e   : > { %v1178_v37 = vpop.permute.xlu0 %1177  ;;  %v1424_v62 = vpop.permute.xlu2 %1423 }
 0x23f   : > { %v1184_v38 = vsel %vm1183_vm14, %v1178_v37, %v1180_v26  ;;  %v1190_v39 = vsel %vm1183_vm14, %v1176_v31, %v1178_v37  ;;  %v1160_v42 = vpop.permute.xlu1 %1159  ;;  %v1508_v37 = vpack.c.bf16 %v2150_v33, %v2150_v33  ;;  %vm1980_vm14 = vcmask 1040384  }
 0x240   : > { %v1199_v40 = vsel %vm1198_vm15, %v1190_v39, 0  ;;  %v1202_v41 = vsel %vm1198_vm15, %v1184_v38, 0  ;;  %v1166_v44 = vsel %vm1165_vm3, %v1160_v42, %v1162_v24  ;;  %v1172_v45 = vsel %vm1165_vm3, %v1151_v35, %v1160_v42 }
 0x241   : > { %1217 = vmatpush.bf16.msrb.mxu0 %v1199_v40  ;;  %1230 = vmatpush.bf16.msrb.mxu1 %v1202_v41  ;;  %v1265_v46 = vsel %vm1198_vm15, %v1172_v45, 0  ;;  %v1268_v47 = vsel %vm1198_vm15, %v1166_v44, 0 }
 0x244   : > { %2132 = vmatmul.msk.bf16.vlgmr.msrb.gmra.mxu0 %vm1194_vm0, %v1193_v29  ;;  %2133 = vmatmul.msk.bf16.vlgmr.msrb.gmra.mxu1 %vm1194_vm0, %v1193_v29 }
 0x245   : > { %1283 = vmatpush.bf16.msra.mxu0 %v1265_v46  ;;  %1296 = vmatpush.bf16.msra.mxu1 %v1268_v47 }
 0x246   : > { %v1164_v51 = vpop.permute.xlu0 %1163  ;;  %v1585_v23 = vpop.permute.xlu2 %1584 }
 0x247   : > { %v1167_v52 = vsel %vm1165_vm3, %v1162_v24, %v1164_v51  ;;  %v1168_v49 = vsel %vm1165_vm3, %v1164_v51, %v1151_v35  ;;  %v1335_v55 = vpop.permute.xlu1 %1334  ;;  %v1435_v24 = vpack.c.bf16 %v2145_v20, %v2145_v20 }
 0x248   : > { %v1271_v53 = vsel %vm1198_vm15, %v1167_v52, 0  ;;  %v1274_v54 = vsel %vm1198_vm15, %v1168_v49, 0  ;;  %v1339_v57 = vsel %vm1336_vm2, %v1335_v55, %v1329_v30 }
 0x249   : > { %1368 = vmatpush.bf16.msrb.mxu0 %v1350_v48  ;;  %1309 = vmatpush.bf16.msra.mxu2 %v1271_v53  ;;  %v1359_v58 = vsel %vm1198_vm15, %v1339_v57, 0  ;;  %v2155_v48 = vld [vmem:[%s2823_s5 + $0x5] sm:$0x1] }
 0x24a   : > { %1322 = vmatpush.bf16.msra.mxu3 %v1274_v54  ;;  %v1598_v52 = vpack.c.bf16 %v2155_v48, %v2155_v48 }
 0x24c   : > { %2138 = vmatmul.msk.bf16.vlgmr.msra.gmra.mxu2 %vm1194_vm0, %v1174_v56 }
 0x24d   : > { %2139 = vmatmul.msk.bf16.vlgmr.msra.gmra.mxu3 %vm1194_vm0, %v1174_v56 }
 0x24e   : > { %1407 = vmatpush.bf16.msrb.mxu3 %v1359_v58  ;;  %v1333_v59 = vpop.permute.xlu0 %1332  ;;  %v1670_v30 = vpop.permute.xlu2 %1669 }
 0x24f   : > { %v1337_v60 = vsel %vm1336_vm2, %v1331_v36, %v1333_v59  ;;  %v1338_v61 = vsel %vm1336_vm2, %v1333_v59, %v1335_v55  ;;  %v1422_v1 = vpop.permute.xlu1 %1421 }
 0x250   : > { %v1353_v63 = vsel %vm1198_vm15, %v1337_v60, 0  ;;  %v1356_v0 = vsel %vm1198_vm15, %v1338_v61, 0  ;;  %v1427_v2 = vsel %vm1425_vm4, %v1422_v1, %v1424_v62 }
 0x251   : > { %1381 = vmatpush.bf16.msrb.mxu1 %v1353_v63  ;;  %1394 = vmatpush.bf16.msrb.mxu2 %v1356_v0  ;;  %v1445_v3 = vsel %vm1198_vm15, %v1427_v2, 0 }
 0x254   : > { %2136 = vmatmul.msk.bf16.vlgmr.msra.gmra.mxu0 %vm1194_vm0, %v1174_v56  ;;  %2137 = vmatmul.msk.bf16.vlgmr.msra.gmra.mxu1 %vm1194_vm0, %v1174_v56 }
 0x255   : > { %1483 = vmatpush.bf16.msra.mxu2 %v1445_v3 }
 0x256   : > { %v1418_v5 = vpop.permute.xlu0 %1417  ;;  %v1672_v42 = vpop.permute.xlu2 %1671 }
 0x257   : > { %v1428_v6 = vsel %vm1425_vm4, %v1424_v62, %v1418_v5  ;;  %v1581_v17 = vpop.permute.xlu1 %1580  ;;  %v1678_v43 = vsel %vm1677_vm6, %v1670_v30, %v1672_v42  ;;  %v2160_v62 = vld [vmem:[%s2823_s5 + $0x6] sm:$0x1] }
 0x258   : > { %v1448_v7 = vsel %vm1198_vm15, %v1428_v6, 0  ;;  %v1692_v46 = vsel %vm1198_vm15, %v1678_v43, 0 }
 0x259   : > { %1496 = vmatpush.bf16.msra.mxu3 %v1448_v7 }
 0x25c   : > { %2143 = vmatmul.msk.bf16.vlgmr.msrb.gmra.mxu2 %vm1194_vm0, %v1346_v8 }
 0x25d   : > { %2144 = vmatmul.msk.bf16.vlgmr.msrb.gmra.mxu3 %vm1194_vm0, %v1346_v8  ;;  %1557 = vmatpush.bf16.msrb.mxu2 %v1519_v9 }
 0x25e   : > { %1570 = vmatpush.bf16.msrb.mxu3 %v1522_v10  ;;  %v1420_v12 = vpop.permute.xlu0 %1419  ;;  %v1765_v51 = vpop.permute.xlu2 %1764 }
 0x25f   : > { %v1426_v14 = vsel %vm1425_vm4, %v1420_v12, %v1422_v1  ;;  %v1432_v15 = vsel %vm1425_vm4, %v1418_v5, %v1420_v12  ;;  %v1583_v27 = vpop.permute.xlu1 %1582  ;;  %v1687_v1 = vpack.c.bf16 %v2160_v62, %v2160_v62  ;;  %v2165_v12 = vld [vmem:[%s2823_s5 + $0x7] sm:$0x1] }
 0x260   : > { %v1439_v16 = vsel %vm1198_vm15, %v1432_v15, 0  ;;  %v1442_v11 = vsel %vm1198_vm15, %v1426_v14, 0  ;;  %v1589_v13 = vsel %vm1588_vm5, %v1581_v17, %v1583_v27  ;;  %v1590_v29 = vsel %vm1588_vm5, %v1583_v27, %v1585_v23  ;;  %v2170_v15 = vld [vmem:[%s2823_s5 + $0x8] sm:$0x1] }
 0x261   : > { %1457 = vmatpush.bf16.msra.mxu0 %v1439_v16  ;;  %1470 = vmatpush.bf16.msra.mxu1 %v1442_v11  ;;  %v1603_v31 = vsel %vm1198_vm15, %v1589_v13, 0  ;;  %v1606_v32 = vsel %vm1198_vm15, %v1590_v29, 0  ;;  %v1776_v14 = vpack.c.bf16 %v2165_v12, %v2165_v12  ;;  %v1865_v16 = vpack.c.bf16 %v2170_v15, %v2170_v15 }
 0x264   : > { %2141 = vmatmul.msk.bf16.vlgmr.msrb.gmra.mxu0 %vm1194_vm0, %v1346_v8  ;;  %2142 = vmatmul.msk.bf16.vlgmr.msrb.gmra.mxu1 %vm1194_vm0, %v1346_v8 }
 0x265   : > { %1531 = vmatpush.bf16.msrb.mxu0 %v1513_v18  ;;  %1544 = vmatpush.bf16.msrb.mxu1 %v1516_v19 }
 0x266   : > { %v1587_v22 = vpop.permute.xlu0 %1586  ;;  %v1852_v0 = vpop.permute.xlu2 %1851 }
 0x267   : > { %v1591_v25 = vsel %vm1588_vm5, %v1585_v23, %v1587_v22  ;;  %v1595_v26 = vsel %vm1588_vm5, %v1587_v22, %v1581_v17  ;;  %v1676_v35 = vpop.permute.xlu1 %1675 }
 0x268   : > { %v1609_v28 = vsel %vm1198_vm15, %v1591_v25, 0  ;;  %v1611_v21 = vsel %vm1198_vm15, %v1595_v26, 0  ;;  %v1684_v38 = vsel %vm1677_vm6, %v1676_v35, %v1670_v30 }
 0x269   : > { %v1700_v40 = vsel %vm1198_vm15, %v1684_v38, 0 }
 0x26c   : > { %2148 = vmatmul.msk.bf16.vlgmr.msra.gmra.mxu2 %vm1194_vm0, %v1435_v24 }
 0x26d   : > { %2149 = vmatmul.msk.bf16.vlgmr.msra.gmra.mxu3 %vm1194_vm0, %v1435_v24  ;;  %1646 = vmatpush.bf16.msra.mxu2 %v1609_v28 }
 0x26e   : > { %1659 = vmatpush.bf16.msra.mxu3 %v1611_v21  ;;  %v1674_v36 = vpop.permute.xlu0 %1673 }
 0x26f   : > { %v1680_v39 = vsel %vm1677_vm6, %v1674_v36, %v1676_v35  ;;  %v1679_v44 = vsel %vm1677_vm6, %v1672_v42, %v1674_v36  ;;  %v1763_v50 = vpop.permute.xlu1 %1762 }
 0x270   : > { %v1698_v41 = vsel %vm1198_vm15, %v1680_v39, 0  ;;  %v1695_v47 = vsel %vm1198_vm15, %v1679_v44, 0  ;;  %v1769_v49 = vsel %vm1766_vm7, %v1763_v50, %v1765_v51 }
 0x271   : > { %v1787_v54 = vsel %vm1198_vm15, %v1769_v49, 0 }
 0x274   : > { %2146 = vmatmul.msk.bf16.vlgmr.msra.gmra.mxu0 %vm1194_vm0, %v1435_v24  ;;  %2147 = vmatmul.msk.bf16.vlgmr.msra.gmra.mxu1 %vm1194_vm0, %v1435_v24 }
 0x275   : > { %1620 = vmatpush.bf16.msra.mxu0 %v1603_v31  ;;  %1633 = vmatpush.bf16.msra.mxu1 %v1606_v32 }
 0x276   : > { %v1759_v45 = vpop.permute.xlu0 %1758 }
 0x277   : > { %v1773_v53 = vsel %vm1766_vm7, %v1765_v51, %v1759_v45  ;;  %v1848_v59 = vpop.permute.xlu1 %1847 }
 0x278   : > { %v1789_v55 = vsel %vm1198_vm15, %v1773_v53, 0 }
 0x27c   : > { %2153 = vmatmul.msk.bf16.vlgmr.msrb.gmra.mxu2 %vm1194_vm0, %v1508_v37 }
 0x27d   : > { %2154 = vmatmul.msk.bf16.vlgmr.msrb.gmra.mxu3 %vm1194_vm0, %v1508_v37  ;;  %1735 = vmatpush.bf16.msrb.mxu2 %v1698_v41 }
 0x27e   : > { %1748 = vmatpush.bf16.msrb.mxu3 %v1700_v40  ;;  %v1761_v56 = vpop.permute.xlu0 %1760 }
 0x27f   : > { %v1767_v57 = vsel %vm1766_vm7, %v1759_v45, %v1761_v56  ;;  %v1768_v58 = vsel %vm1766_vm7, %v1761_v56, %v1763_v50  ;;  %v1850_v6 = vpop.permute.xlu1 %1849 }
 0x280   : > { %v1781_v60 = vsel %vm1198_vm15, %v1767_v57, 0  ;;  %v1784_v61 = vsel %vm1198_vm15, %v1768_v58, 0  ;;  %v1856_v7 = vsel %vm1855_vm8, %v1848_v59, %v1850_v6  ;;  %v1857_v8 = vsel %vm1855_vm8, %v1850_v6, %v1852_v0 }
 0x281   : > { %v1870_v9 = vsel %vm1198_vm15, %v1856_v7, 0  ;;  %v1873_v10 = vsel %vm1198_vm15, %v1857_v8, 0 }
 0x284   : > { %2151 = vmatmul.msk.bf16.vlgmr.msrb.gmra.mxu0 %vm1194_vm0, %v1508_v37  ;;  %2152 = vmatmul.msk.bf16.vlgmr.msrb.gmra.mxu1 %vm1194_vm0, %v1508_v37 }
 0x285   : > { %1709 = vmatpush.bf16.msrb.mxu0 %v1692_v46  ;;  %1722 = vmatpush.bf16.msrb.mxu1 %v1695_v47 }
 0x286   : > { %v1854_v63 = vpop.permute.xlu0 %1853 }
 0x287   : > { %v1858_v2 = vsel %vm1855_vm8, %v1852_v0, %v1854_v63  ;;  %v1862_v3 = vsel %vm1855_vm8, %v1854_v63, %v1848_v59 }
 0x288   : > { %v1876_v4 = vsel %vm1198_vm15, %v1858_v2, 0  ;;  %v1878_v5 = vsel %vm1198_vm15, %v1862_v3, 0 }
 0x28c   : > { %2158 = vmatmul.msk.bf16.vlgmr.msra.gmra.mxu2 %vm1194_vm0, %v1598_v52 }
 0x28d   : > { %2159 = vmatmul.msk.bf16.vlgmr.msra.gmra.mxu3 %vm1194_vm0, %v1598_v52  ;;  %1824 = vmatpush.bf16.msra.mxu2 %v1787_v54 }
 0x28e   : > { %1837 = vmatpush.bf16.msra.mxu3 %v1789_v55 }
 0x294   : > { %2156 = vmatmul.msk.bf16.vlgmr.msra.gmra.mxu0 %vm1194_vm0, %v1598_v52  ;;  %2157 = vmatmul.msk.bf16.vlgmr.msra.gmra.mxu1 %vm1194_vm0, %v1598_v52 }
 0x295   : > { %1798 = vmatpush.bf16.msra.mxu0 %v1781_v60  ;;  %1811 = vmatpush.bf16.msra.mxu1 %v1784_v61 }
 0x29c   : > { %2163 = vmatmul.msk.bf16.vlgmr.msrb.gmra.mxu2 %vm1194_vm0, %v1687_v1 }
 0x29d   : > { %2164 = vmatmul.msk.bf16.vlgmr.msrb.gmra.mxu3 %vm1194_vm0, %v1687_v1  ;;  %1913 = vmatpush.bf16.msrb.mxu2 %v1876_v4 }
 0x29e   : > { %1926 = vmatpush.bf16.msrb.mxu3 %v1878_v5 }
 0x2a4   : > { %2161 = vmatmul.msk.bf16.vlgmr.msrb.gmra.mxu0 %vm1194_vm0, %v1687_v1  ;;  %2162 = vmatmul.msk.bf16.vlgmr.msrb.gmra.mxu1 %vm1194_vm0, %v1687_v1 }
 0x2a5   : > { %1887 = vmatpush.bf16.msrb.mxu0 %v1870_v9  ;;  %1900 = vmatpush.bf16.msrb.mxu1 %v1873_v10 }
 0x2ac   : > { %2168 = vmatmul.msk.bf16.vlgmr.msra.gmra.mxu2 %vm1194_vm0, %v1776_v14 }
 0x2ad   : > { %2169 = vmatmul.msk.bf16.vlgmr.msra.gmra.mxu3 %vm1194_vm0, %v1776_v14 }
 0x2b4   : > { %2166 = vmatmul.msk.bf16.vlgmr.msra.gmra.mxu0 %vm1194_vm0, %v1776_v14  ;;  %2167 = vmatmul.msk.bf16.vlgmr.msra.gmra.mxu1 %vm1194_vm0, %v1776_v14 }
 0x2b8   : > { %v1245_v11 = vpop.f32.mrf.mxu2 }
 0x2bc   : > { %2173 = vmatmul.msk.bf16.vlgmr.msrb.gmra.mxu2 %vm1194_vm0, %v1865_v16 }
 0x2bd   : > { %2174 = vmatmul.msk.bf16.vlgmr.msrb.gmra.mxu3 %vm1194_vm0, %v1865_v16 }
 0x2bf   : > { %v1258_v17 = vpop.f32.mrf.mxu3 }
 0x2c0   : > { %v1247_v20 = vpop.f32.mrf.mxu2 }
 0x2c1   : > { %v1219_v18 = vpop.f32.mrf.mxu0  ;;  %v1232_v19 = vpop.f32.mrf.mxu1 }
 0x2c4   : > { %2171 = vmatmul.msk.bf16.vlgmr.msrb.gmra.mxu0 %vm1194_vm0, %v1865_v16  ;;  %2172 = vmatmul.msk.bf16.vlgmr.msrb.gmra.mxu1 %vm1194_vm0, %v1865_v16 }
 0x2c7   : > { %v1260_v22 = vpop.f32.mrf.mxu3 }
 0x2c9   : > { %v1221_v23 = vpop.f32.mrf.mxu0  ;;  %v1234_v24 = vpop.f32.mrf.mxu1 }
 0x2cf   : > { %v1311_v25 = vpop.f32.mrf.mxu2 }
 0x2d0   : > { %v1324_v26 = vpop.f32.mrf.mxu3  ;;  %v1312_v27 = vadd.f32 %v1311_v25, %v1245_v11 }
 0x2d1   : > { %v1325_v28 = vadd.f32 %v1324_v26, %v1258_v17  ;;  %v1285_v21 = vpop.f32.mrf.mxu0  ;;  %v1298_v13 = vpop.f32.mrf.mxu1 }
 0x2d2   : > { %v1286_v29 = vadd.f32 %v1285_v21, %v1219_v18  ;;  %v1299_v30 = vadd.f32 %v1298_v13, %v1232_v19 }
 0x2d7   : > { %v1313_v31 = vpop.f32.mrf.mxu2 }
 0x2d8   : > { %v1326_v32 = vpop.f32.mrf.mxu3 }
 0x2d9   : > { %v1287_v33 = vpop.f32.mrf.mxu0  ;;  %v1300_v35 = vpop.f32.mrf.mxu1 }
 0x2da   : > { %v1940_v35 = vpop.permute.xlu2 %1939 }
 0x2df   : > { %v1396_v36 = vpop.f32.mrf.mxu2 }
 0x2e0   : > { %v1409_v37 = vpop.f32.mrf.mxu3  ;;  %v1415_v38 = vadd.f32 %v1396_v36, %v1312_v27 }
 0x2e1   : > { %v1416_v39 = vadd.f32 %v1409_v37, %v1325_v28  ;;  %v1370_v40 = vpop.f32.mrf.mxu0  ;;  %v1383_v41 = vpop.f32.mrf.mxu1 }
 0x2e2   : > { %v1413_v42 = vadd.f32 %v1370_v40, %v1286_v29  ;;  %v1414_v43 = vadd.f32 %v1383_v41, %v1299_v30 }
 0x2e7   : > { %v1398_v44 = vpop.f32.mrf.mxu2 }
 0x2e8   : > { %v1411_v45 = vpop.f32.mrf.mxu3  ;;  %v1942_v44 = vperm.slane %v1940_v35, 0 }
 0x2e9   : > { %v1372_v46 = vpop.f32.mrf.mxu0  ;;  %v1385_v47 = vpop.f32.mrf.mxu1 }
 0x2ef   : > { %v1485_v48 = vpop.f32.mrf.mxu2 }
 0x2f0   : > { %v1498_v50 = vpop.f32.mrf.mxu3  ;;  %v1504_v51 = vadd.f32 %v1485_v48, %v1415_v38 }
 0x2f1   : > { %v1505_v52 = vadd.f32 %v1498_v50, %v1416_v39  ;;  %v1459_v49 = vpop.f32.mrf.mxu0  ;;  %v1472_v53 = vpop.f32.mrf.mxu1 }
 0x2f2   : > { %v1502_v54 = vadd.f32 %v1459_v49, %v1413_v42  ;;  %v1503_v55 = vadd.f32 %v1472_v53, %v1414_v43 }
 0x2f7   : > { %v1487_v56 = vpop.f32.mrf.mxu2 }
 0x2f8   : > { %v1500_v57 = vpop.f32.mrf.mxu3 }
 0x2f9   : > { %v1461_v58 = vpop.f32.mrf.mxu0  ;;  %v1474_v59 = vpop.f32.mrf.mxu1 }
 0x2fa   : > { %v1963_v58 = vperm.slane %v2609_v34, 5  ;;  %v1964_v59 = vperm.slane %v2609_v34, 7 }
 0x2ff   : > { %v1559_v60 = vpop.f32.mrf.mxu2 }
 0x300   : > { %v1572_v61 = vpop.f32.mrf.mxu3  ;;  %v1578_v28 = vadd.f32 %v1559_v60, %v1504_v51 }
 0x301   : > { %v1533_v62 = vpop.f32.mrf.mxu0  ;;  %v1546_v63 = vpop.f32.mrf.mxu1  ;;  %v1579_v21 = vadd.f32 %v1572_v61, %v1505_v52  ;;  %v1952_v52 = vstv %s2175_s21 }
 0x302   : > { %v1576_v30 = vadd.f32 %v1533_v62, %v1502_v54  ;;  %v1577_v31 = vadd.f32 %v1546_v63, %v1503_v55 }
 0x307   : > { %v1561_v0 = vpop.f32.mrf.mxu2 }
 0x308   : > { %v1574_v1 = vpop.f32.mrf.mxu3 }
 0x309   : > { %v1535_v2 = vpop.f32.mrf.mxu0  ;;  %v1548_v3 = vpop.f32.mrf.mxu1 }
 0x30a   : > { %v1962_v2 = vperm.slane %v2609_v34, 3 }
 0x30f   : > { %v1648_v4 = vpop.f32.mrf.mxu2 }
 0x310   : > { %v1661_v5 = vpop.f32.mrf.mxu3  ;;  %v1667_v32 = vadd.f32 %v1648_v4, %v1578_v28 }
 0x311   : > { %v1622_v6 = vpop.f32.mrf.mxu0  ;;  %v1635_v7 = vpop.f32.mrf.mxu1  ;;  %v1668_v33 = vadd.f32 %v1661_v5, %v1579_v21 }
 0x312   : > { %v1665_v36 = vadd.f32 %v1622_v6, %v1576_v30  ;;  %v1666_v37 = vadd.f32 %v1635_v7, %v1577_v31 }
 0x317   : > { %v1650_v8 = vpop.f32.mrf.mxu2 }
 0x318   : > { %v1663_v9 = vpop.f32.mrf.mxu3 }
 0x319   : > { %v1624_v10 = vpop.f32.mrf.mxu0  ;;  %v1637_v12 = vpop.f32.mrf.mxu1 }
 0x31a   : > { %v1961_v12 = vperm.slane %v2609_v34, 1 }
 0x31f   : > { %v1737_v14 = vpop.f32.mrf.mxu2 }
 0x320   : > { %v1750_v15 = vpop.f32.mrf.mxu3  ;;  %v1756_v38 = vadd.f32 %v1737_v14, %v1667_v32 }
 0x321   : > { %v1711_v16 = vpop.f32.mrf.mxu0  ;;  %v1724_v11 = vpop.f32.mrf.mxu1  ;;  %v1757_v39 = vadd.f32 %v1750_v15, %v1668_v33 }
 0x322   : > { %v1754_v40 = vadd.f32 %v1711_v16, %v1665_v36  ;;  %v1755_v41 = vadd.f32 %v1724_v11, %v1666_v37 }
 0x327   : > { %v1739_v17 = vpop.f32.mrf.mxu2 }
 0x328   : > { %v1752_v18 = vpop.f32.mrf.mxu3  ;;  %v1986_v17 = vlaneseq }
 0x329   : > { %v1713_v19 = vpop.f32.mrf.mxu0  ;;  %v1726_v20 = vpop.f32.mrf.mxu1 }
 0x32a   : > { %vm1988_vm15 = vcmp.lt.s32.totalorder %v1986_v17, 512 }
 0x32f   : > { %v1826_v22 = vpop.f32.mrf.mxu2 }
 0x330   : > { %v1839_v23 = vpop.f32.mrf.mxu3  ;;  %v1845_v42 = vadd.f32 %v1826_v22, %v1756_v38 }
 0x331   : > { %v1800_v24 = vpop.f32.mrf.mxu0  ;;  %v1813_v25 = vpop.f32.mrf.mxu1  ;;  %v1846_v43 = vadd.f32 %v1839_v23, %v1757_v39 }
 0x332   : > { %v1843_v47 = vadd.f32 %v1800_v24, %v1754_v40  ;;  %v1844_v48 = vadd.f32 %v1813_v25, %v1755_v41 }
 0x337   : > { %v1828_v26 = vpop.f32.mrf.mxu2 }
 0x338   : > { %v1841_v27 = vpop.f32.mrf.mxu3 }
 0x339   : > { %v1802_v13 = vpop.f32.mrf.mxu0  ;;  %v1815_v29 = vpop.f32.mrf.mxu1 }
 0x33f   : > { %v1915_v45 = vpop.f32.mrf.mxu2 }
 0x340   : > { %v1928_v46 = vpop.f32.mrf.mxu3  ;;  %v1934_v50 = vadd.f32 %v1915_v45, %v1845_v42 }
 0x341   : > { %v1935_v51 = vadd.f32 %v1928_v46, %v1846_v43  ;;  %v1889_v49 = vpop.f32.mrf.mxu0  ;;  %v1902_v53 = vpop.f32.mrf.mxu1 }
 0x342   : > { %v1945_v54 = vadd.f32 %v1942_v44, %v1934_v50  ;;  %v1932_v56 = vadd.f32 %v1889_v49, %v1843_v47  ;;  %v1933_v57 = vadd.f32 %v1902_v53, %v1844_v48 }
 0x343   : > { %v1946_v55 = vadd.f32 %v1942_v44, %v1935_v51 }
 0x344   : > { %vm1950_vm9 = vcmp.ge.f32.partialorder %v1945_v54, 0.0  ;;  %v1955_v60 = vmul.f32 %v1952_v52, %v1945_v54  ;;  %v1943_v62 = vadd.f32 %v1942_v44, %v1932_v56  ;;  %v1944_v63 = vadd.f32 %v1942_v44, %v1933_v57 }
 0x345   : > { %vm1951_vm10 = vcmp.ge.f32.partialorder %v1946_v55, 0.0  ;;  %v1956_v61 = vmul.f32 %v1952_v52, %v1946_v55 }
 0x346   : > { %v1959_v0 = vsel %vm1950_vm9, %v1945_v54, %v1955_v60  ;;  %vm1948_vm11 = vcmp.ge.f32.partialorder %v1943_v62, 0.0  ;;  %v1953_v5 = vmul.f32 %v1952_v52, %v1943_v62  ;;  %vm1949_vm12 = vcmp.ge.f32.partialorder %v1944_v63, 0.0 }
 0x347   : > { %v1960_v1 = vsel %vm1951_vm10, %v1946_v55, %v1956_v61  ;;  %v1971_v3 = vmul.f32 %v1963_v58, %v1959_v0  ;;  %v1917_v6 = vpop.f32.mrf.mxu2  ;;  %v1954_v8 = vmul.f32 %v1952_v52, %v1944_v63 }
 0x348   : > { %v1972_v4 = vmul.f32 %v1964_v59, %v1960_v1  ;;  %v1930_v7 = vpop.f32.mrf.mxu3  ;;  %v1957_v16 = vsel %vm1948_vm11, %v1943_v62, %v1953_v5 }
 0x349   : > { %v1978_v9 = vrot.slane %v1971_v3, 6  ;;  %v1904_v14 = vpop.f32.mrf.mxu1  ;;  %v1891_v15 = vpop.f32.mrf.mxu0  ;;  %v1958_v11 = vsel %vm1949_vm12, %v1944_v63, %v1954_v8  ;;  %v1969_v20 = vmul.f32 %v1961_v12, %v1957_v16 }
 0x34a   : > { %v1979_v10 = vrot.slane %v1972_v4, 5  ;;  %v1970_v18 = vmul.f32 %v1962_v2, %v1958_v11 }
 0x34c   : > { %v1983_v19 = vsel %vm1982_vm13, %v1978_v9, %v1979_v10  ;;  %v1977_v22 = vrot.slane %v1970_v18, 7 }
 0x34e   : > { %v1981_v34 = vsel %vm1980_vm14, %v1969_v20, %v1977_v22 }
 0x34f   : > { %v1984_v23 = vsel %vm366_vm1, %v1981_v34, %v1983_v19 }
 0x350   : > { %1990 = vst.msk [vmem:[%s288_s30] sm:$0xf] %vm1988_vm15, %v1984_v23 }
 0x351   : > { %2291 = shalt.err (!%p2288_p8)
}
 0x352   : > { %2184 = dma.vmem_to_hbm [thread:$0]  (%p2428_p5), %s2005_s9, 64, %s2007_s10, %s1992_s18  }
 0x353 PF: > { %p2196_p9 = scmp.ge.s32.totalorder %s2330_s29, 2  ;;  %s2018_s22 = sand.u32 1, %s2318_s26  }
 0x354   : > { %s2019_s23 = scalar_lea.sflag [#allocation4], %s2018_s22 }
 0x355   : > { %p2191_p10 = pnand %p2196_p9, %p2432_p6 }
 0x357   : > { %p2192_p11 = pneg %p2191_p10 }
 0x359   : > { %2313 = dma.done.wait (%p2192_p11), %s2019_s23, 64  }
 0x35a   : > { %2315 = vsyncadd (%p2192_p11), %s2019_s23, 4294967232  ;;  %p20_p12 = scmp.ge.s32.totalorder %s2416_s8, 4   ;;  %s2828_s26 = smov %s2322_s27 }
 0x35b   : > { %s2829_s27 = smov %s2326_s28  ;;  %s2830_s28 = smov %s2426_s11 }
 0x35c   : > { %s2831_s29 = smov %s2416_s8  ;;  %22 = sbr.rel (!%p20_p12) target bundleno = 7 (0x7), region = 105 }
 0x361   :  { %2025 = vsyncpa [#allocation4], 1 }
 0x362   :  { %2027 = vsyncpa [#allocation4 + $0x1], 1 }
 0x363   :  { %2028 = vsyncpa [#allocation5], 1 }
 0x364   :  { %2030 = vsyncpa [#allocation5 + $0x1], 1 }

</bundles_post_ra>
